<compile_context>
chip_gen: v6e
topology: v6e:2x2x1
jax: 0.10.0
libtpu: 0.0.40
codegen_flags: <defaults>
</compile_context>

<pallas_src>
import math

import jax
import jax.numpy as jnp
from jax import lax
from jax.experimental import pallas as pl
from jax.experimental.pallas import tpu as pltpu  # noqa: F401 (TPU backend)

# ---- model hyperparameters (small, consistent with the module) ----
VOCAB_SIZE = 64
VOCAB_PAD = 128            # lane-dense logits width inside the kernel
EMBED_DIM = 32
NUM_HEADS = 4
HEAD_DIM = EMBED_DIM // NUM_HEADS
FF_DIM = EMBED_DIM * 4
NUM_LAYERS = 2
BLOCK_SIZE = 16
SEQ_LEN = 8
BATCH = 2
LN_EPS = 1e-5
VEC_W = 128                # packed-parameter slab width (>= FF_DIM, 3E, VOCAB_PAD)
NEG_MASK = -1e30           # large finite negative (robust vs -inf)


def _layernorm(x, gamma, beta):
    mu = jnp.mean(x, axis=-1, keepdims=True)
    var = jnp.mean((x - mu) ** 2, axis=-1, keepdims=True)
    return (x - mu) * lax.rsqrt(var + LN_EPS) * gamma + beta


# --------------------------------------------------------------------------
# Fused forward kernel: all layers + final LN + tied lm_head, single step.
# --------------------------------------------------------------------------
def _make_fused_kernel(B, S):
    E, H, D, F = EMBED_DIM, NUM_HEADS, HEAD_DIM, FF_DIM
    BS = B * S
    scale = 1.0 / math.sqrt(D)

    def kernel(x_ref, vecs_ref, wqkv_ref, wo_ref, w1_ref, w2_ref,
               fvec_ref, lmw_ref, o_ref):
        num_layers = wqkv_ref.shape[0]
        x = x_ref[...].reshape(BS, E)                 # (B*S, E)

        # block-diagonal (same batch element) & causal mask on flattened rows
        r = lax.broadcasted_iota(jnp.int32, (BS, BS), 0)
        c = lax.broadcasted_iota(jnp.int32, (BS, BS), 1)
        if S & (S - 1) == 0:                          # power-of-two seq len
            sh = int(math.log2(S))
            rb, cb, rp, cp = r >> sh, c >> sh, r & (S - 1), c & (S - 1)
        else:
            rb, cb, rp, cp = r // S, c // S, r % S, c % S
        mask = ((rb == cb) & (cp <= rp))[None]        # (1, B*S, B*S)

        def split_heads(mat, base):                   # -> (H, B*S, D)
            return jnp.stack(
                [mat[:, base + h * D: base + (h + 1) * D] for h in range(H)],
                axis=0)

        vecs = vecs_ref[...]                          # (L, 8, 128) packed vectors
        for l in range(num_layers):
            vec = vecs[l]
            ln1_g, ln1_b = vec[0, :E], vec[1, :E]
            bqkv = vec[2, :3 * E]
            bo = vec[3, :E]
            ln2_g, ln2_b = vec[4, :E], vec[5, :E]
            b1 = vec[6, :F]
            b2 = vec[7, :E]

            # ---- LN1 + causal multi-head self-attention + residual ----
            nx = _layernorm(x, ln1_g, ln1_b)
            qkv = jnp.dot(nx, wqkv_ref[l],
                          preferred_element_type=jnp.float32) + bqkv   # (BS, 3E)
            q = split_heads(qkv, 0)
            k = split_heads(qkv, E)
            v = split_heads(qkv, 2 * E)

            s = jnp.einsum('hqd,hkd->hqk', q, k,
                           preferred_element_type=jnp.float32) * scale  # (H,BS,BS)
            s = jnp.where(mask, s, NEG_MASK)
            s = s - jnp.max(s, axis=-1, keepdims=True)
            p = jnp.exp(s)
            p = p * pl.reciprocal(jnp.sum(p, axis=-1, keepdims=True), approx=True)
            ctx = jnp.einsum('hqk,hkd->hqd', p, v,
                             preferred_element_type=jnp.float32)        # (H,BS,D)
            attn = jnp.concatenate([ctx[h] for h in range(H)], axis=-1)  # (BS, E)
            attn = jnp.dot(attn, wo_ref[l],
                           preferred_element_type=jnp.float32) + bo
            x = x + attn                               # dropout == identity (eval)

            # ---- LN2 + FFN + residual ----
            nx2 = _layernorm(x, ln2_g, ln2_b)
            h1 = jnp.maximum(
                jnp.dot(nx2, w1_ref[l], preferred_element_type=jnp.float32) + b1,
                0.0)                                   # ReLU
            h2 = jnp.dot(h1, w2_ref[l], preferred_element_type=jnp.float32) + b2
            x = x + h2                                 # dropout == identity (eval)

        # ---- final LN + tied lm_head (lane-dense 128-wide output) ----
        fv = fvec_ref[...]                             # (8, 128)
        nx = _layernorm(x, fv[0, :E], fv[1, :E])
        logits = jnp.dot(nx, lmw_ref[...],
                         preferred_element_type=jnp.float32) + fv[2, :]
        o_ref[...] = logits.reshape(B, S, VOCAB_PAD)

    return kernel


# --------------------------------------------------------------------------
# Deterministic parameter initialization with packed layout.
#   * weights pre-transposed so kernels compute x @ W (PyTorch does x @ W^T)
#   * LN gammas/betas + all biases packed into (L, 8, 128) / (8, 128) slabs
#   * tied lm_head weight pre-transposed & zero-padded to (E, 128) at init
# --------------------------------------------------------------------------
def init_params(key):
    def normal(k, shape, std=0.02):
        return std * jax.random.normal(k, shape, dtype=jnp.float32)

    def row(v):
        return jnp.zeros((VEC_W,), jnp.float32).at[:v.shape[0]].set(v)

    keys = iter(jax.random.split(key, 2 + 4 * NUM_LAYERS))
    tok_emb = normal(next(keys), (VOCAB_SIZE, EMBED_DIM))   # tied with lm_head
    pos_emb = normal(next(keys), (BLOCK_SIZE, EMBED_DIM))

    vecs, wqkv, wo, w1, w2 = [], [], [], [], []
    for _ in range(NUM_LAYERS):
        wqkv.append(normal(next(keys), (EMBED_DIM, 3 * EMBED_DIM)))  # in_proj_weight^T
        wo.append(normal(next(keys), (EMBED_DIM, EMBED_DIM)))        # out_proj.weight^T
        w1.append(normal(next(keys), (EMBED_DIM, FF_DIM)))           # ffn[0].weight^T
        w2.append(normal(next(keys), (FF_DIM, EMBED_DIM)))           # ffn[2].weight^T
        vecs.append(jnp.stack([
            row(jnp.ones((EMBED_DIM,), jnp.float32)),     # 0 ln1 gamma
            row(jnp.zeros((EMBED_DIM,), jnp.float32)),    # 1 ln1 beta
            row(jnp.zeros((3 * EMBED_DIM,), jnp.float32)),  # 2 in_proj bias
            row(jnp.zeros((EMBED_DIM,), jnp.float32)),    # 3 out_proj bias
            row(jnp.ones((EMBED_DIM,), jnp.float32)),     # 4 ln2 gamma
            row(jnp.zeros((EMBED_DIM,), jnp.float32)),    # 5 ln2 beta
            row(jnp.zeros((FF_DIM,), jnp.float32)),       # 6 ffn[0] bias
            row(jnp.zeros((EMBED_DIM,), jnp.float32)),    # 7 ffn[2] bias
        ]))

    fvec = jnp.stack(
        [row(jnp.ones((EMBED_DIM,), jnp.float32)),        # 0 ln_final gamma
         row(jnp.zeros((EMBED_DIM,), jnp.float32)),       # 1 ln_final beta
         row(jnp.zeros((VOCAB_SIZE,), jnp.float32))]      # 2 lm_head bias (padded)
        + [jnp.zeros((VEC_W,), jnp.float32)] * 5)         # pad to 8 sublanes

    # tied lm_head weight: token_embedding.weight^T, padded to 128 lanes (once)
    lm_w = jnp.zeros((EMBED_DIM, VOCAB_PAD), jnp.float32).at[:, :VOCAB_SIZE].set(
        tok_emb.T)

    return {
        "tok_emb": tok_emb,
        "pos_emb": pos_emb,
        "vecs": jnp.stack(vecs),      # (L, 8, 128)
        "wqkv": jnp.stack(wqkv),      # (L, E, 3E)
        "wo": jnp.stack(wo),          # (L, E, E)
        "w1": jnp.stack(w1),          # (L, E, FF)
        "w2": jnp.stack(w2),          # (L, FF, E)
        "fvec": fvec,                 # (8, 128)
        "lm_w": lm_w,                 # (E, 128)
    }


def gpt_forward(idx, params):
    B, S = idx.shape
    tok = jnp.take(params["tok_emb"], idx, axis=0)        # (B, S, E) embedding gather
    pos = params["pos_emb"][:S]                           # (S, E)
    x = (tok + pos[None, :, :]).astype(jnp.float32)       # dropout == identity (eval)

    out = pl.pallas_call(
        _make_fused_kernel(B, S),
        out_shape=jax.ShapeDtypeStruct((B, S, VOCAB_PAD), jnp.float32),
    )(x, params["vecs"], params["wqkv"], params["wo"],
      params["w1"], params["w2"], params["fvec"], params["lm_w"])

    return out[..., :VOCAB_SIZE]                          # drop lane padding


if __name__ == "__main__":
    key = jax.random.PRNGKey(0)
    params = init_params(key)
    idx = jax.random.randint(jax.random.fold_in(key, 999),
                             (BATCH, SEQ_LEN), 0, VOCAB_SIZE, dtype=jnp.int32)
    fwd = jax.jit(gpt_forward)
    logits = fwd(idx, params)
    jax.block_until_ready(logits)
    assert logits.shape == (BATCH, SEQ_LEN, VOCAB_SIZE)
    assert bool(jnp.all(jnp.isfinite(logits)))
    print("KERNEL_OK")
</pallas_src>

<mosaic_0001>
module attributes {stable_mosaic.version = 11 : i64} {
  func.func @kernel(%arg0: memref<2x8x32xf32, #tpu.memory_space<vmem>>, %arg1: memref<2x8x128xf32, #tpu.memory_space<vmem>>, %arg2: memref<2x32x96xf32, #tpu.memory_space<vmem>>, %arg3: memref<2x32x32xf32, #tpu.memory_space<vmem>>, %arg4: memref<2x32x128xf32, #tpu.memory_space<vmem>>, %arg5: memref<2x128x32xf32, #tpu.memory_space<vmem>>, %arg6: memref<8x128xf32, #tpu.memory_space<vmem>>, %arg7: memref<32x128xf32, #tpu.memory_space<vmem>>, %arg8: memref<2x8x128xf32, #tpu.memory_space<vmem>>) attributes {dimension_semantics = [], scalar_prefetch = 0 : i64, scratch_operands = 0 : i64, tpu.core_type = #tpu.core_type<tc>} {
    %c0 = arith.constant 0 : index
    %c0_0 = arith.constant 0 : index
    %c0_1 = arith.constant 0 : index
    %0 = vector.load %arg0[%c0, %c0_0, %c0_1] : memref<2x8x32xf32, #tpu.memory_space<vmem>>, vector<2x8x32xf32>
    %1 = vector.shape_cast %0 : vector<2x8x32xf32> to vector<16x32xf32>
    %2 = tpu.iota {dimensions = array<i32: 0>} : vector<16x16xi32>
    %3 = tpu.iota {dimensions = array<i32: 1>} : vector<16x16xi32>
    %c3_i32 = arith.constant 3 : i32
    %4 = vector.broadcast %c3_i32 : i32 to vector<16x16xi32>
    %5 = arith.shrsi %2, %4 : vector<16x16xi32>
    %c3_i32_2 = arith.constant 3 : i32
    %6 = vector.broadcast %c3_i32_2 : i32 to vector<16x16xi32>
    %7 = arith.shrsi %3, %6 : vector<16x16xi32>
    %c7_i32 = arith.constant 7 : i32
    %8 = vector.broadcast %c7_i32 : i32 to vector<16x16xi32>
    %9 = arith.andi %2, %8 : vector<16x16xi32>
    %c7_i32_3 = arith.constant 7 : i32
    %10 = vector.broadcast %c7_i32_3 : i32 to vector<16x16xi32>
    %11 = arith.andi %3, %10 : vector<16x16xi32>
    %12 = arith.cmpi eq, %5, %7 : vector<16x16xi32>
    %13 = arith.cmpi sle, %11, %9 : vector<16x16xi32>
    %14 = arith.andi %12, %13 : vector<16x16xi1>
    %15 = vector.shape_cast %14 : vector<16x16xi1> to vector<1x16x16xi1>
    %c0_4 = arith.constant 0 : index
    %c0_5 = arith.constant 0 : index
    %c0_6 = arith.constant 0 : index
    %16 = vector.load %arg1[%c0_4, %c0_5, %c0_6] : memref<2x8x128xf32, #tpu.memory_space<vmem>>, vector<2x8x128xf32>
    %17 = vector.extract_strided_slice %16 {offsets = [0, 0, 0], sizes = [1, 8, 128], strides = [1, 1, 1]} : vector<2x8x128xf32> to vector<1x8x128xf32>
    %18 = vector.shape_cast %17 : vector<1x8x128xf32> to vector<8x128xf32>
    %19 = vector.extract_strided_slice %18 {offsets = [0, 0], sizes = [1, 32], strides = [1, 1]} : vector<8x128xf32> to vector<1x32xf32>
    %20 = vector.shape_cast %19 : vector<1x32xf32> to vector<32xf32>
    %21 = vector.extract_strided_slice %18 {offsets = [1, 0], sizes = [1, 32], strides = [1, 1]} : vector<8x128xf32> to vector<1x32xf32>
    %22 = vector.shape_cast %21 : vector<1x32xf32> to vector<32xf32>
    %23 = vector.extract_strided_slice %18 {offsets = [2, 0], sizes = [1, 96], strides = [1, 1]} : vector<8x128xf32> to vector<1x96xf32>
    %24 = vector.shape_cast %23 : vector<1x96xf32> to vector<96xf32>
    %25 = vector.extract_strided_slice %18 {offsets = [3, 0], sizes = [1, 32], strides = [1, 1]} : vector<8x128xf32> to vector<1x32xf32>
    %26 = vector.shape_cast %25 : vector<1x32xf32> to vector<32xf32>
    %27 = vector.extract_strided_slice %18 {offsets = [4, 0], sizes = [1, 32], strides = [1, 1]} : vector<8x128xf32> to vector<1x32xf32>
    %28 = vector.shape_cast %27 : vector<1x32xf32> to vector<32xf32>
    %29 = vector.extract_strided_slice %18 {offsets = [5, 0], sizes = [1, 32], strides = [1, 1]} : vector<8x128xf32> to vector<1x32xf32>
    %30 = vector.shape_cast %29 : vector<1x32xf32> to vector<32xf32>
    %31 = vector.extract_strided_slice %18 {offsets = [6, 0], sizes = [1, 128], strides = [1, 1]} : vector<8x128xf32> to vector<1x128xf32>
    %32 = vector.shape_cast %31 : vector<1x128xf32> to vector<128xf32>
    %33 = vector.extract_strided_slice %18 {offsets = [7, 0], sizes = [1, 32], strides = [1, 1]} : vector<8x128xf32> to vector<1x32xf32>
    %34 = vector.shape_cast %33 : vector<1x32xf32> to vector<32xf32>
    %cst = arith.constant dense<0.000000e+00> : vector<16xf32>
    %35 = vector.multi_reduction <add>, %1, %cst [1] : vector<16x32xf32> to vector<16xf32>
    %36 = vector.shape_cast %35 : vector<16xf32> to vector<16x1xf32>
    %cst_7 = arith.constant 3.200000e+01 : f32
    %37 = vector.broadcast %cst_7 : f32 to vector<16x1xf32>
    %38 = arith.divf %36, %37 : vector<16x1xf32>
    %39 = vector.broadcast %38 : vector<16x1xf32> to vector<16x32xf32>
    %40 = arith.subf %1, %39 : vector<16x32xf32>
    %41 = arith.mulf %40, %40 : vector<16x32xf32>
    %cst_8 = arith.constant dense<0.000000e+00> : vector<16xf32>
    %42 = vector.multi_reduction <add>, %41, %cst_8 [1] : vector<16x32xf32> to vector<16xf32>
    %43 = vector.shape_cast %42 : vector<16xf32> to vector<16x1xf32>
    %cst_9 = arith.constant 3.200000e+01 : f32
    %44 = vector.broadcast %cst_9 : f32 to vector<16x1xf32>
    %45 = arith.divf %43, %44 : vector<16x1xf32>
    %46 = vector.broadcast %38 : vector<16x1xf32> to vector<16x32xf32>
    %47 = arith.subf %1, %46 : vector<16x32xf32>
    %cst_10 = arith.constant 9.99999974E-6 : f32
    %48 = vector.broadcast %cst_10 : f32 to vector<16x1xf32>
    %49 = arith.addf %45, %48 : vector<16x1xf32>
    %50 = math.rsqrt %49 : vector<16x1xf32>
    %51 = vector.broadcast %50 : vector<16x1xf32> to vector<16x32xf32>
    %52 = arith.mulf %47, %51 : vector<16x32xf32>
    %53 = vector.shape_cast %20 : vector<32xf32> to vector<1x32xf32>
    %54 = vector.broadcast %53 : vector<1x32xf32> to vector<16x32xf32>
    %55 = arith.mulf %52, %54 : vector<16x32xf32>
    %56 = vector.shape_cast %22 : vector<32xf32> to vector<1x32xf32>
    %57 = vector.broadcast %56 : vector<1x32xf32> to vector<16x32xf32>
    %58 = arith.addf %55, %57 : vector<16x32xf32>
    %c0_11 = arith.constant 0 : index
    %c0_12 = arith.constant 0 : index
    %c0_13 = arith.constant 0 : index
    %59 = vector.load %arg2[%c0_11, %c0_12, %c0_13] : memref<2x32x96xf32, #tpu.memory_space<vmem>>, vector<1x32x96xf32>
    %60 = vector.shape_cast %59 : vector<1x32x96xf32> to vector<32x96xf32>
    %cst_14 = arith.constant dense<0.000000e+00> : vector<16x96xf32>
    %61 = tpu.matmul %58, %60, %cst_14 {dimension_numbers = #tpu.dot_dimension_numbers<[1], [0], [0], [1], [0, 0, 1, 1], [], []>} : vector<16x32xf32>, vector<32x96xf32>, vector<16x96xf32> -> vector<16x96xf32>
    %62 = vector.shape_cast %24 : vector<96xf32> to vector<1x96xf32>
    %63 = vector.broadcast %62 : vector<1x96xf32> to vector<16x96xf32>
    %64 = arith.addf %61, %63 : vector<16x96xf32>
    %65 = vector.extract_strided_slice %64 {offsets = [0, 0], sizes = [16, 8], strides = [1, 1]} : vector<16x96xf32> to vector<16x8xf32>
    %66 = vector.extract_strided_slice %64 {offsets = [0, 8], sizes = [16, 8], strides = [1, 1]} : vector<16x96xf32> to vector<16x8xf32>
    %67 = vector.extract_strided_slice %64 {offsets = [0, 16], sizes = [16, 8], strides = [1, 1]} : vector<16x96xf32> to vector<16x8xf32>
    %68 = vector.extract_strided_slice %64 {offsets = [0, 24], sizes = [16, 8], strides = [1, 1]} : vector<16x96xf32> to vector<16x8xf32>
    %69 = vector.shape_cast %65 : vector<16x8xf32> to vector<1x16x8xf32>
    %70 = vector.shape_cast %66 : vector<16x8xf32> to vector<1x16x8xf32>
    %71 = vector.shape_cast %67 : vector<16x8xf32> to vector<1x16x8xf32>
    %72 = vector.shape_cast %68 : vector<16x8xf32> to vector<1x16x8xf32>
    %73 = tpu.concatenate %69, %70, %71, %72 in 0 : vector<1x16x8xf32>, vector<1x16x8xf32>, vector<1x16x8xf32>, vector<1x16x8xf32> -> vector<4x16x8xf32>
    %74 = vector.extract_strided_slice %64 {offsets = [0, 32], sizes = [16, 8], strides = [1, 1]} : vector<16x96xf32> to vector<16x8xf32>
    %75 = vector.extract_strided_slice %64 {offsets = [0, 40], sizes = [16, 8], strides = [1, 1]} : vector<16x96xf32> to vector<16x8xf32>
    %76 = vector.extract_strided_slice %64 {offsets = [0, 48], sizes = [16, 8], strides = [1, 1]} : vector<16x96xf32> to vector<16x8xf32>
    %77 = vector.extract_strided_slice %64 {offsets = [0, 56], sizes = [16, 8], strides = [1, 1]} : vector<16x96xf32> to vector<16x8xf32>
    %78 = vector.shape_cast %74 : vector<16x8xf32> to vector<1x16x8xf32>
    %79 = vector.shape_cast %75 : vector<16x8xf32> to vector<1x16x8xf32>
    %80 = vector.shape_cast %76 : vector<16x8xf32> to vector<1x16x8xf32>
    %81 = vector.shape_cast %77 : vector<16x8xf32> to vector<1x16x8xf32>
    %82 = tpu.concatenate %78, %79, %80, %81 in 0 : vector<1x16x8xf32>, vector<1x16x8xf32>, vector<1x16x8xf32>, vector<1x16x8xf32> -> vector<4x16x8xf32>
    %83 = vector.extract_strided_slice %64 {offsets = [0, 64], sizes = [16, 8], strides = [1, 1]} : vector<16x96xf32> to vector<16x8xf32>
    %84 = vector.extract_strided_slice %64 {offsets = [0, 72], sizes = [16, 8], strides = [1, 1]} : vector<16x96xf32> to vector<16x8xf32>
    %85 = vector.extract_strided_slice %64 {offsets = [0, 80], sizes = [16, 8], strides = [1, 1]} : vector<16x96xf32> to vector<16x8xf32>
    %86 = vector.extract_strided_slice %64 {offsets = [0, 88], sizes = [16, 8], strides = [1, 1]} : vector<16x96xf32> to vector<16x8xf32>
    %87 = vector.shape_cast %83 : vector<16x8xf32> to vector<1x16x8xf32>
    %88 = vector.shape_cast %84 : vector<16x8xf32> to vector<1x16x8xf32>
    %89 = vector.shape_cast %85 : vector<16x8xf32> to vector<1x16x8xf32>
    %90 = vector.shape_cast %86 : vector<16x8xf32> to vector<1x16x8xf32>
    %91 = tpu.concatenate %87, %88, %89, %90 in 0 : vector<1x16x8xf32>, vector<1x16x8xf32>, vector<1x16x8xf32>, vector<1x16x8xf32> -> vector<4x16x8xf32>
    "tpu.trace_start"() <{level = 10 : i32, message = "hqd,hkd->hqk"}> : () -> ()
    %cst_15 = arith.constant dense<0.000000e+00> : vector<4x16x16xf32>
    %92 = tpu.matmul %73, %82, %cst_15 {dimension_numbers = #tpu.dot_dimension_numbers<[2], [2], [1], [1], [0, 0, 0, 1, 1, 1], [0], [0]>} : vector<4x16x8xf32>, vector<4x16x8xf32>, vector<4x16x16xf32> -> vector<4x16x16xf32>
    "tpu.trace_stop"() : () -> ()
    %cst_16 = arith.constant 0.353553385 : f32
    %93 = vector.broadcast %cst_16 : f32 to vector<4x16x16xf32>
    %94 = arith.mulf %92, %93 : vector<4x16x16xf32>
    %cst_17 = arith.constant -1.000000e+30 : f32
    %95 = vector.shape_cast %15 : vector<1x16x16xi1> to vector<1x16x16xi1>
    %96 = vector.broadcast %95 : vector<1x16x16xi1> to vector<4x16x16xi1>
    %97 = vector.broadcast %cst_17 : f32 to vector<4x16x16xf32>
    %98 = arith.select %96, %94, %97 : vector<4x16x16xi1>, vector<4x16x16xf32>
    %cst_18 = arith.constant dense<0xFF800000> : vector<4x16xf32>
    %99 = vector.multi_reduction <maximumf>, %98, %cst_18 [2] : vector<4x16x16xf32> to vector<4x16xf32>
    %100 = vector.shape_cast %99 : vector<4x16xf32> to vector<4x16x1xf32>
    %101 = vector.broadcast %100 : vector<4x16x1xf32> to vector<4x16x16xf32>
    %102 = arith.subf %98, %101 : vector<4x16x16xf32>
    %103 = math.exp %102 : vector<4x16x16xf32>
    %cst_19 = arith.constant dense<0.000000e+00> : vector<4x16xf32>
    %104 = vector.multi_reduction <add>, %103, %cst_19 [2] : vector<4x16x16xf32> to vector<4x16xf32>
    %105 = vector.shape_cast %104 : vector<4x16xf32> to vector<4x16x1xf32>
    %106 = tpu.reciprocal %105 {approx = true} : vector<4x16x1xf32> -> vector<4x16x1xf32>
    %107 = vector.broadcast %106 : vector<4x16x1xf32> to vector<4x16x16xf32>
    %108 = arith.mulf %103, %107 : vector<4x16x16xf32>
    "tpu.trace_start"() <{level = 10 : i32, message = "hqk,hkd->hqd"}> : () -> ()
    %cst_20 = arith.constant dense<0.000000e+00> : vector<4x16x8xf32>
    %109 = tpu.matmul %108, %91, %cst_20 {dimension_numbers = #tpu.dot_dimension_numbers<[2], [1], [1], [2], [0, 0, 0, 1, 1, 2], [0], [0]>} : vector<4x16x16xf32>, vector<4x16x8xf32>, vector<4x16x8xf32> -> vector<4x16x8xf32>
    "tpu.trace_stop"() : () -> ()
    %110 = vector.extract_strided_slice %109 {offsets = [0, 0, 0], sizes = [1, 16, 8], strides = [1, 1, 1]} : vector<4x16x8xf32> to vector<1x16x8xf32>
    %111 = vector.shape_cast %110 : vector<1x16x8xf32> to vector<16x8xf32>
    %112 = vector.extract_strided_slice %109 {offsets = [1, 0, 0], sizes = [1, 16, 8], strides = [1, 1, 1]} : vector<4x16x8xf32> to vector<1x16x8xf32>
    %113 = vector.shape_cast %112 : vector<1x16x8xf32> to vector<16x8xf32>
    %114 = vector.extract_strided_slice %109 {offsets = [2, 0, 0], sizes = [1, 16, 8], strides = [1, 1, 1]} : vector<4x16x8xf32> to vector<1x16x8xf32>
    %115 = vector.shape_cast %114 : vector<1x16x8xf32> to vector<16x8xf32>
    %116 = vector.extract_strided_slice %109 {offsets = [3, 0, 0], sizes = [1, 16, 8], strides = [1, 1, 1]} : vector<4x16x8xf32> to vector<1x16x8xf32>
    %117 = vector.shape_cast %116 : vector<1x16x8xf32> to vector<16x8xf32>
    %118 = tpu.concatenate %111, %113, %115, %117 in 1 : vector<16x8xf32>, vector<16x8xf32>, vector<16x8xf32>, vector<16x8xf32> -> vector<16x32xf32>
    %c0_21 = arith.constant 0 : index
    %c0_22 = arith.constant 0 : index
    %c0_23 = arith.constant 0 : index
    %119 = vector.load %arg3[%c0_21, %c0_22, %c0_23] : memref<2x32x32xf32, #tpu.memory_space<vmem>>, vector<1x32x32xf32>
    %120 = vector.shape_cast %119 : vector<1x32x32xf32> to vector<32x32xf32>
    %cst_24 = arith.constant dense<0.000000e+00> : vector<16x32xf32>
    %121 = tpu.matmul %118, %120, %cst_24 {dimension_numbers = #tpu.dot_dimension_numbers<[1], [0], [0], [1], [0, 0, 1, 1], [], []>} : vector<16x32xf32>, vector<32x32xf32>, vector<16x32xf32> -> vector<16x32xf32>
    %122 = vector.shape_cast %26 : vector<32xf32> to vector<1x32xf32>
    %123 = vector.broadcast %122 : vector<1x32xf32> to vector<16x32xf32>
    %124 = arith.addf %121, %123 : vector<16x32xf32>
    %125 = arith.addf %1, %124 : vector<16x32xf32>
    %cst_25 = arith.constant dense<0.000000e+00> : vector<16xf32>
    %126 = vector.multi_reduction <add>, %125, %cst_25 [1] : vector<16x32xf32> to vector<16xf32>
    %127 = vector.shape_cast %126 : vector<16xf32> to vector<16x1xf32>
    %cst_26 = arith.constant 3.200000e+01 : f32
    %128 = vector.broadcast %cst_26 : f32 to vector<16x1xf32>
    %129 = arith.divf %127, %128 : vector<16x1xf32>
    %130 = vector.broadcast %129 : vector<16x1xf32> to vector<16x32xf32>
    %131 = arith.subf %125, %130 : vector<16x32xf32>
    %132 = arith.mulf %131, %131 : vector<16x32xf32>
    %cst_27 = arith.constant dense<0.000000e+00> : vector<16xf32>
    %133 = vector.multi_reduction <add>, %132, %cst_27 [1] : vector<16x32xf32> to vector<16xf32>
    %134 = vector.shape_cast %133 : vector<16xf32> to vector<16x1xf32>
    %cst_28 = arith.constant 3.200000e+01 : f32
    %135 = vector.broadcast %cst_28 : f32 to vector<16x1xf32>
    %136 = arith.divf %134, %135 : vector<16x1xf32>
    %137 = vector.broadcast %129 : vector<16x1xf32> to vector<16x32xf32>
    %138 = arith.subf %125, %137 : vector<16x32xf32>
    %cst_29 = arith.constant 9.99999974E-6 : f32
    %139 = vector.broadcast %cst_29 : f32 to vector<16x1xf32>
    %140 = arith.addf %136, %139 : vector<16x1xf32>
    %141 = math.rsqrt %140 : vector<16x1xf32>
    %142 = vector.broadcast %141 : vector<16x1xf32> to vector<16x32xf32>
    %143 = arith.mulf %138, %142 : vector<16x32xf32>
    %144 = vector.shape_cast %28 : vector<32xf32> to vector<1x32xf32>
    %145 = vector.broadcast %144 : vector<1x32xf32> to vector<16x32xf32>
    %146 = arith.mulf %143, %145 : vector<16x32xf32>
    %147 = vector.shape_cast %30 : vector<32xf32> to vector<1x32xf32>
    %148 = vector.broadcast %147 : vector<1x32xf32> to vector<16x32xf32>
    %149 = arith.addf %146, %148 : vector<16x32xf32>
    %c0_30 = arith.constant 0 : index
    %c0_31 = arith.constant 0 : index
    %c0_32 = arith.constant 0 : index
    %150 = vector.load %arg4[%c0_30, %c0_31, %c0_32] : memref<2x32x128xf32, #tpu.memory_space<vmem>>, vector<1x32x128xf32>
    %151 = vector.shape_cast %150 : vector<1x32x128xf32> to vector<32x128xf32>
    %cst_33 = arith.constant dense<0.000000e+00> : vector<16x128xf32>
    %152 = tpu.matmul %149, %151, %cst_33 {dimension_numbers = #tpu.dot_dimension_numbers<[1], [0], [0], [1], [0, 0, 1, 1], [], []>} : vector<16x32xf32>, vector<32x128xf32>, vector<16x128xf32> -> vector<16x128xf32>
    %153 = vector.shape_cast %32 : vector<128xf32> to vector<1x128xf32>
    %154 = vector.broadcast %153 : vector<1x128xf32> to vector<16x128xf32>
    %155 = arith.addf %152, %154 : vector<16x128xf32>
    %cst_34 = arith.constant 0.000000e+00 : f32
    %156 = vector.broadcast %cst_34 : f32 to vector<16x128xf32>
    %157 = arith.maximumf %155, %156 : vector<16x128xf32>
    %c0_35 = arith.constant 0 : index
    %c0_36 = arith.constant 0 : index
    %c0_37 = arith.constant 0 : index
    %158 = vector.load %arg5[%c0_35, %c0_36, %c0_37] : memref<2x128x32xf32, #tpu.memory_space<vmem>>, vector<1x128x32xf32>
    %159 = vector.shape_cast %158 : vector<1x128x32xf32> to vector<128x32xf32>
    %cst_38 = arith.constant dense<0.000000e+00> : vector<16x32xf32>
    %160 = tpu.matmul %157, %159, %cst_38 {dimension_numbers = #tpu.dot_dimension_numbers<[1], [0], [0], [1], [0, 0, 1, 1], [], []>} : vector<16x128xf32>, vector<128x32xf32>, vector<16x32xf32> -> vector<16x32xf32>
    %161 = vector.shape_cast %34 : vector<32xf32> to vector<1x32xf32>
    %162 = vector.broadcast %161 : vector<1x32xf32> to vector<16x32xf32>
    %163 = arith.addf %160, %162 : vector<16x32xf32>
    %164 = arith.addf %125, %163 : vector<16x32xf32>
    %165 = vector.extract_strided_slice %16 {offsets = [1, 0, 0], sizes = [1, 8, 128], strides = [1, 1, 1]} : vector<2x8x128xf32> to vector<1x8x128xf32>
    %166 = vector.shape_cast %165 : vector<1x8x128xf32> to vector<8x128xf32>
    %167 = vector.extract_strided_slice %166 {offsets = [0, 0], sizes = [1, 32], strides = [1, 1]} : vector<8x128xf32> to vector<1x32xf32>
    %168 = vector.shape_cast %167 : vector<1x32xf32> to vector<32xf32>
    %169 = vector.extract_strided_slice %166 {offsets = [1, 0], sizes = [1, 32], strides = [1, 1]} : vector<8x128xf32> to vector<1x32xf32>
    %170 = vector.shape_cast %169 : vector<1x32xf32> to vector<32xf32>
    %171 = vector.extract_strided_slice %166 {offsets = [2, 0], sizes = [1, 96], strides = [1, 1]} : vector<8x128xf32> to vector<1x96xf32>
    %172 = vector.shape_cast %171 : vector<1x96xf32> to vector<96xf32>
    %173 = vector.extract_strided_slice %166 {offsets = [3, 0], sizes = [1, 32], strides = [1, 1]} : vector<8x128xf32> to vector<1x32xf32>
    %174 = vector.shape_cast %173 : vector<1x32xf32> to vector<32xf32>
    %175 = vector.extract_strided_slice %166 {offsets = [4, 0], sizes = [1, 32], strides = [1, 1]} : vector<8x128xf32> to vector<1x32xf32>
    %176 = vector.shape_cast %175 : vector<1x32xf32> to vector<32xf32>
    %177 = vector.extract_strided_slice %166 {offsets = [5, 0], sizes = [1, 32], strides = [1, 1]} : vector<8x128xf32> to vector<1x32xf32>
    %178 = vector.shape_cast %177 : vector<1x32xf32> to vector<32xf32>
    %179 = vector.extract_strided_slice %166 {offsets = [6, 0], sizes = [1, 128], strides = [1, 1]} : vector<8x128xf32> to vector<1x128xf32>
    %180 = vector.shape_cast %179 : vector<1x128xf32> to vector<128xf32>
    %181 = vector.extract_strided_slice %166 {offsets = [7, 0], sizes = [1, 32], strides = [1, 1]} : vector<8x128xf32> to vector<1x32xf32>
    %182 = vector.shape_cast %181 : vector<1x32xf32> to vector<32xf32>
    %cst_39 = arith.constant dense<0.000000e+00> : vector<16xf32>
    %183 = vector.multi_reduction <add>, %164, %cst_39 [1] : vector<16x32xf32> to vector<16xf32>
    %184 = vector.shape_cast %183 : vector<16xf32> to vector<16x1xf32>
    %cst_40 = arith.constant 3.200000e+01 : f32
    %185 = vector.broadcast %cst_40 : f32 to vector<16x1xf32>
    %186 = arith.divf %184, %185 : vector<16x1xf32>
    %187 = vector.broadcast %186 : vector<16x1xf32> to vector<16x32xf32>
    %188 = arith.subf %164, %187 : vector<16x32xf32>
    %189 = arith.mulf %188, %188 : vector<16x32xf32>
    %cst_41 = arith.constant dense<0.000000e+00> : vector<16xf32>
    %190 = vector.multi_reduction <add>, %189, %cst_41 [1] : vector<16x32xf32> to vector<16xf32>
    %191 = vector.shape_cast %190 : vector<16xf32> to vector<16x1xf32>
    %cst_42 = arith.constant 3.200000e+01 : f32
    %192 = vector.broadcast %cst_42 : f32 to vector<16x1xf32>
    %193 = arith.divf %191, %192 : vector<16x1xf32>
    %194 = vector.broadcast %186 : vector<16x1xf32> to vector<16x32xf32>
    %195 = arith.subf %164, %194 : vector<16x32xf32>
    %cst_43 = arith.constant 9.99999974E-6 : f32
    %196 = vector.broadcast %cst_43 : f32 to vector<16x1xf32>
    %197 = arith.addf %193, %196 : vector<16x1xf32>
    %198 = math.rsqrt %197 : vector<16x1xf32>
    %199 = vector.broadcast %198 : vector<16x1xf32> to vector<16x32xf32>
    %200 = arith.mulf %195, %199 : vector<16x32xf32>
    %201 = vector.shape_cast %168 : vector<32xf32> to vector<1x32xf32>
    %202 = vector.broadcast %201 : vector<1x32xf32> to vector<16x32xf32>
    %203 = arith.mulf %200, %202 : vector<16x32xf32>
    %204 = vector.shape_cast %170 : vector<32xf32> to vector<1x32xf32>
    %205 = vector.broadcast %204 : vector<1x32xf32> to vector<16x32xf32>
    %206 = arith.addf %203, %205 : vector<16x32xf32>
    %c1 = arith.constant 1 : index
    %c0_44 = arith.constant 0 : index
    %c0_45 = arith.constant 0 : index
    %207 = vector.load %arg2[%c1, %c0_44, %c0_45] : memref<2x32x96xf32, #tpu.memory_space<vmem>>, vector<1x32x96xf32>
    %208 = vector.shape_cast %207 : vector<1x32x96xf32> to vector<32x96xf32>
    %cst_46 = arith.constant dense<0.000000e+00> : vector<16x96xf32>
    %209 = tpu.matmul %206, %208, %cst_46 {dimension_numbers = #tpu.dot_dimension_numbers<[1], [0], [0], [1], [0, 0, 1, 1], [], []>} : vector<16x32xf32>, vector<32x96xf32>, vector<16x96xf32> -> vector<16x96xf32>
    %210 = vector.shape_cast %172 : vector<96xf32> to vector<1x96xf32>
    %211 = vector.broadcast %210 : vector<1x96xf32> to vector<16x96xf32>
    %212 = arith.addf %209, %211 : vector<16x96xf32>
    %213 = vector.extract_strided_slice %212 {offsets = [0, 0], sizes = [16, 8], strides = [1, 1]} : vector<16x96xf32> to vector<16x8xf32>
    %214 = vector.extract_strided_slice %212 {offsets = [0, 8], sizes = [16, 8], strides = [1, 1]} : vector<16x96xf32> to vector<16x8xf32>
    %215 = vector.extract_strided_slice %212 {offsets = [0, 16], sizes = [16, 8], strides = [1, 1]} : vector<16x96xf32> to vector<16x8xf32>
    %216 = vector.extract_strided_slice %212 {offsets = [0, 24], sizes = [16, 8], strides = [1, 1]} : vector<16x96xf32> to vector<16x8xf32>
    %217 = vector.shape_cast %213 : vector<16x8xf32> to vector<1x16x8xf32>
    %218 = vector.shape_cast %214 : vector<16x8xf32> to vector<1x16x8xf32>
    %219 = vector.shape_cast %215 : vector<16x8xf32> to vector<1x16x8xf32>
    %220 = vector.shape_cast %216 : vector<16x8xf32> to vector<1x16x8xf32>
    %221 = tpu.concatenate %217, %218, %219, %220 in 0 : vector<1x16x8xf32>, vector<1x16x8xf32>, vector<1x16x8xf32>, vector<1x16x8xf32> -> vector<4x16x8xf32>
    %222 = vector.extract_strided_slice %212 {offsets = [0, 32], sizes = [16, 8], strides = [1, 1]} : vector<16x96xf32> to vector<16x8xf32>
    %223 = vector.extract_strided_slice %212 {offsets = [0, 40], sizes = [16, 8], strides = [1, 1]} : vector<16x96xf32> to vector<16x8xf32>
    %224 = vector.extract_strided_slice %212 {offsets = [0, 48], sizes = [16, 8], strides = [1, 1]} : vector<16x96xf32> to vector<16x8xf32>
    %225 = vector.extract_strided_slice %212 {offsets = [0, 56], sizes = [16, 8], strides = [1, 1]} : vector<16x96xf32> to vector<16x8xf32>
    %226 = vector.shape_cast %222 : vector<16x8xf32> to vector<1x16x8xf32>
    %227 = vector.shape_cast %223 : vector<16x8xf32> to vector<1x16x8xf32>
    %228 = vector.shape_cast %224 : vector<16x8xf32> to vector<1x16x8xf32>
    %229 = vector.shape_cast %225 : vector<16x8xf32> to vector<1x16x8xf32>
    %230 = tpu.concatenate %226, %227, %228, %229 in 0 : vector<1x16x8xf32>, vector<1x16x8xf32>, vector<1x16x8xf32>, vector<1x16x8xf32> -> vector<4x16x8xf32>
    %231 = vector.extract_strided_slice %212 {offsets = [0, 64], sizes = [16, 8], strides = [1, 1]} : vector<16x96xf32> to vector<16x8xf32>
    %232 = vector.extract_strided_slice %212 {offsets = [0, 72], sizes = [16, 8], strides = [1, 1]} : vector<16x96xf32> to vector<16x8xf32>
    %233 = vector.extract_strided_slice %212 {offsets = [0, 80], sizes = [16, 8], strides = [1, 1]} : vector<16x96xf32> to vector<16x8xf32>
    %234 = vector.extract_strided_slice %212 {offsets = [0, 88], sizes = [16, 8], strides = [1, 1]} : vector<16x96xf32> to vector<16x8xf32>
    %235 = vector.shape_cast %231 : vector<16x8xf32> to vector<1x16x8xf32>
    %236 = vector.shape_cast %232 : vector<16x8xf32> to vector<1x16x8xf32>
    %237 = vector.shape_cast %233 : vector<16x8xf32> to vector<1x16x8xf32>
    %238 = vector.shape_cast %234 : vector<16x8xf32> to vector<1x16x8xf32>
    %239 = tpu.concatenate %235, %236, %237, %238 in 0 : vector<1x16x8xf32>, vector<1x16x8xf32>, vector<1x16x8xf32>, vector<1x16x8xf32> -> vector<4x16x8xf32>
    "tpu.trace_start"() <{level = 10 : i32, message = "hqd,hkd->hqk"}> : () -> ()
    %cst_47 = arith.constant dense<0.000000e+00> : vector<4x16x16xf32>
    %240 = tpu.matmul %221, %230, %cst_47 {dimension_numbers = #tpu.dot_dimension_numbers<[2], [2], [1], [1], [0, 0, 0, 1, 1, 1], [0], [0]>} : vector<4x16x8xf32>, vector<4x16x8xf32>, vector<4x16x16xf32> -> vector<4x16x16xf32>
    "tpu.trace_stop"() : () -> ()
    %cst_48 = arith.constant 0.353553385 : f32
    %241 = vector.broadcast %cst_48 : f32 to vector<4x16x16xf32>
    %242 = arith.mulf %240, %241 : vector<4x16x16xf32>
    %cst_49 = arith.constant -1.000000e+30 : f32
    %243 = vector.shape_cast %15 : vector<1x16x16xi1> to vector<1x16x16xi1>
    %244 = vector.broadcast %243 : vector<1x16x16xi1> to vector<4x16x16xi1>
    %245 = vector.broadcast %cst_49 : f32 to vector<4x16x16xf32>
    %246 = arith.select %244, %242, %245 : vector<4x16x16xi1>, vector<4x16x16xf32>
    %cst_50 = arith.constant dense<0xFF800000> : vector<4x16xf32>
    %247 = vector.multi_reduction <maximumf>, %246, %cst_50 [2] : vector<4x16x16xf32> to vector<4x16xf32>
    %248 = vector.shape_cast %247 : vector<4x16xf32> to vector<4x16x1xf32>
    %249 = vector.broadcast %248 : vector<4x16x1xf32> to vector<4x16x16xf32>
    %250 = arith.subf %246, %249 : vector<4x16x16xf32>
    %251 = math.exp %250 : vector<4x16x16xf32>
    %cst_51 = arith.constant dense<0.000000e+00> : vector<4x16xf32>
    %252 = vector.multi_reduction <add>, %251, %cst_51 [2] : vector<4x16x16xf32> to vector<4x16xf32>
    %253 = vector.shape_cast %252 : vector<4x16xf32> to vector<4x16x1xf32>
    %254 = tpu.reciprocal %253 {approx = true} : vector<4x16x1xf32> -> vector<4x16x1xf32>
    %255 = vector.broadcast %254 : vector<4x16x1xf32> to vector<4x16x16xf32>
    %256 = arith.mulf %251, %255 : vector<4x16x16xf32>
    "tpu.trace_start"() <{level = 10 : i32, message = "hqk,hkd->hqd"}> : () -> ()
    %cst_52 = arith.constant dense<0.000000e+00> : vector<4x16x8xf32>
    %257 = tpu.matmul %256, %239, %cst_52 {dimension_numbers = #tpu.dot_dimension_numbers<[2], [1], [1], [2], [0, 0, 0, 1, 1, 2], [0], [0]>} : vector<4x16x16xf32>, vector<4x16x8xf32>, vector<4x16x8xf32> -> vector<4x16x8xf32>
    "tpu.trace_stop"() : () -> ()
    %258 = vector.extract_strided_slice %257 {offsets = [0, 0, 0], sizes = [1, 16, 8], strides = [1, 1, 1]} : vector<4x16x8xf32> to vector<1x16x8xf32>
    %259 = vector.shape_cast %258 : vector<1x16x8xf32> to vector<16x8xf32>
    %260 = vector.extract_strided_slice %257 {offsets = [1, 0, 0], sizes = [1, 16, 8], strides = [1, 1, 1]} : vector<4x16x8xf32> to vector<1x16x8xf32>
    %261 = vector.shape_cast %260 : vector<1x16x8xf32> to vector<16x8xf32>
    %262 = vector.extract_strided_slice %257 {offsets = [2, 0, 0], sizes = [1, 16, 8], strides = [1, 1, 1]} : vector<4x16x8xf32> to vector<1x16x8xf32>
    %263 = vector.shape_cast %262 : vector<1x16x8xf32> to vector<16x8xf32>
    %264 = vector.extract_strided_slice %257 {offsets = [3, 0, 0], sizes = [1, 16, 8], strides = [1, 1, 1]} : vector<4x16x8xf32> to vector<1x16x8xf32>
    %265 = vector.shape_cast %264 : vector<1x16x8xf32> to vector<16x8xf32>
    %266 = tpu.concatenate %259, %261, %263, %265 in 1 : vector<16x8xf32>, vector<16x8xf32>, vector<16x8xf32>, vector<16x8xf32> -> vector<16x32xf32>
    %c1_53 = arith.constant 1 : index
    %c0_54 = arith.constant 0 : index
    %c0_55 = arith.constant 0 : index
    %267 = vector.load %arg3[%c1_53, %c0_54, %c0_55] : memref<2x32x32xf32, #tpu.memory_space<vmem>>, vector<1x32x32xf32>
    %268 = vector.shape_cast %267 : vector<1x32x32xf32> to vector<32x32xf32>
    %cst_56 = arith.constant dense<0.000000e+00> : vector<16x32xf32>
    %269 = tpu.matmul %266, %268, %cst_56 {dimension_numbers = #tpu.dot_dimension_numbers<[1], [0], [0], [1], [0, 0, 1, 1], [], []>} : vector<16x32xf32>, vector<32x32xf32>, vector<16x32xf32> -> vector<16x32xf32>
    %270 = vector.shape_cast %174 : vector<32xf32> to vector<1x32xf32>
    %271 = vector.broadcast %270 : vector<1x32xf32> to vector<16x32xf32>
    %272 = arith.addf %269, %271 : vector<16x32xf32>
    %273 = arith.addf %164, %272 : vector<16x32xf32>
    %cst_57 = arith.constant dense<0.000000e+00> : vector<16xf32>
    %274 = vector.multi_reduction <add>, %273, %cst_57 [1] : vector<16x32xf32> to vector<16xf32>
    %275 = vector.shape_cast %274 : vector<16xf32> to vector<16x1xf32>
    %cst_58 = arith.constant 3.200000e+01 : f32
    %276 = vector.broadcast %cst_58 : f32 to vector<16x1xf32>
    %277 = arith.divf %275, %276 : vector<16x1xf32>
    %278 = vector.broadcast %277 : vector<16x1xf32> to vector<16x32xf32>
    %279 = arith.subf %273, %278 : vector<16x32xf32>
    %280 = arith.mulf %279, %279 : vector<16x32xf32>
    %cst_59 = arith.constant dense<0.000000e+00> : vector<16xf32>
    %281 = vector.multi_reduction <add>, %280, %cst_59 [1] : vector<16x32xf32> to vector<16xf32>
    %282 = vector.shape_cast %281 : vector<16xf32> to vector<16x1xf32>
    %cst_60 = arith.constant 3.200000e+01 : f32
    %283 = vector.broadcast %cst_60 : f32 to vector<16x1xf32>
    %284 = arith.divf %282, %283 : vector<16x1xf32>
    %285 = vector.broadcast %277 : vector<16x1xf32> to vector<16x32xf32>
    %286 = arith.subf %273, %285 : vector<16x32xf32>
    %cst_61 = arith.constant 9.99999974E-6 : f32
    %287 = vector.broadcast %cst_61 : f32 to vector<16x1xf32>
    %288 = arith.addf %284, %287 : vector<16x1xf32>
    %289 = math.rsqrt %288 : vector<16x1xf32>
    %290 = vector.broadcast %289 : vector<16x1xf32> to vector<16x32xf32>
    %291 = arith.mulf %286, %290 : vector<16x32xf32>
    %292 = vector.shape_cast %176 : vector<32xf32> to vector<1x32xf32>
    %293 = vector.broadcast %292 : vector<1x32xf32> to vector<16x32xf32>
    %294 = arith.mulf %291, %293 : vector<16x32xf32>
    %295 = vector.shape_cast %178 : vector<32xf32> to vector<1x32xf32>
    %296 = vector.broadcast %295 : vector<1x32xf32> to vector<16x32xf32>
    %297 = arith.addf %294, %296 : vector<16x32xf32>
    %c1_62 = arith.constant 1 : index
    %c0_63 = arith.constant 0 : index
    %c0_64 = arith.constant 0 : index
    %298 = vector.load %arg4[%c1_62, %c0_63, %c0_64] : memref<2x32x128xf32, #tpu.memory_space<vmem>>, vector<1x32x128xf32>
    %299 = vector.shape_cast %298 : vector<1x32x128xf32> to vector<32x128xf32>
    %cst_65 = arith.constant dense<0.000000e+00> : vector<16x128xf32>
    %300 = tpu.matmul %297, %299, %cst_65 {dimension_numbers = #tpu.dot_dimension_numbers<[1], [0], [0], [1], [0, 0, 1, 1], [], []>} : vector<16x32xf32>, vector<32x128xf32>, vector<16x128xf32> -> vector<16x128xf32>
    %301 = vector.shape_cast %180 : vector<128xf32> to vector<1x128xf32>
    %302 = vector.broadcast %301 : vector<1x128xf32> to vector<16x128xf32>
    %303 = arith.addf %300, %302 : vector<16x128xf32>
    %cst_66 = arith.constant 0.000000e+00 : f32
    %304 = vector.broadcast %cst_66 : f32 to vector<16x128xf32>
    %305 = arith.maximumf %303, %304 : vector<16x128xf32>
    %c1_67 = arith.constant 1 : index
    %c0_68 = arith.constant 0 : index
    %c0_69 = arith.constant 0 : index
    %306 = vector.load %arg5[%c1_67, %c0_68, %c0_69] : memref<2x128x32xf32, #tpu.memory_space<vmem>>, vector<1x128x32xf32>
    %307 = vector.shape_cast %306 : vector<1x128x32xf32> to vector<128x32xf32>
    %cst_70 = arith.constant dense<0.000000e+00> : vector<16x32xf32>
    %308 = tpu.matmul %305, %307, %cst_70 {dimension_numbers = #tpu.dot_dimension_numbers<[1], [0], [0], [1], [0, 0, 1, 1], [], []>} : vector<16x128xf32>, vector<128x32xf32>, vector<16x32xf32> -> vector<16x32xf32>
    %309 = vector.shape_cast %182 : vector<32xf32> to vector<1x32xf32>
    %310 = vector.broadcast %309 : vector<1x32xf32> to vector<16x32xf32>
    %311 = arith.addf %308, %310 : vector<16x32xf32>
    %312 = arith.addf %273, %311 : vector<16x32xf32>
    %c0_71 = arith.constant 0 : index
    %c0_72 = arith.constant 0 : index
    %313 = vector.load %arg6[%c0_71, %c0_72] : memref<8x128xf32, #tpu.memory_space<vmem>>, vector<8x128xf32>
    %314 = vector.extract_strided_slice %313 {offsets = [0, 0], sizes = [1, 32], strides = [1, 1]} : vector<8x128xf32> to vector<1x32xf32>
    %315 = vector.shape_cast %314 : vector<1x32xf32> to vector<32xf32>
    %316 = vector.extract_strided_slice %313 {offsets = [1, 0], sizes = [1, 32], strides = [1, 1]} : vector<8x128xf32> to vector<1x32xf32>
    %317 = vector.shape_cast %316 : vector<1x32xf32> to vector<32xf32>
    %cst_73 = arith.constant dense<0.000000e+00> : vector<16xf32>
    %318 = vector.multi_reduction <add>, %312, %cst_73 [1] : vector<16x32xf32> to vector<16xf32>
    %319 = vector.shape_cast %318 : vector<16xf32> to vector<16x1xf32>
    %cst_74 = arith.constant 3.200000e+01 : f32
    %320 = vector.broadcast %cst_74 : f32 to vector<16x1xf32>
    %321 = arith.divf %319, %320 : vector<16x1xf32>
    %322 = vector.broadcast %321 : vector<16x1xf32> to vector<16x32xf32>
    %323 = arith.subf %312, %322 : vector<16x32xf32>
    %324 = arith.mulf %323, %323 : vector<16x32xf32>
    %cst_75 = arith.constant dense<0.000000e+00> : vector<16xf32>
    %325 = vector.multi_reduction <add>, %324, %cst_75 [1] : vector<16x32xf32> to vector<16xf32>
    %326 = vector.shape_cast %325 : vector<16xf32> to vector<16x1xf32>
    %cst_76 = arith.constant 3.200000e+01 : f32
    %327 = vector.broadcast %cst_76 : f32 to vector<16x1xf32>
    %328 = arith.divf %326, %327 : vector<16x1xf32>
    %329 = vector.broadcast %321 : vector<16x1xf32> to vector<16x32xf32>
    %330 = arith.subf %312, %329 : vector<16x32xf32>
    %cst_77 = arith.constant 9.99999974E-6 : f32
    %331 = vector.broadcast %cst_77 : f32 to vector<16x1xf32>
    %332 = arith.addf %328, %331 : vector<16x1xf32>
    %333 = math.rsqrt %332 : vector<16x1xf32>
    %334 = vector.broadcast %333 : vector<16x1xf32> to vector<16x32xf32>
    %335 = arith.mulf %330, %334 : vector<16x32xf32>
    %336 = vector.shape_cast %315 : vector<32xf32> to vector<1x32xf32>
    %337 = vector.broadcast %336 : vector<1x32xf32> to vector<16x32xf32>
    %338 = arith.mulf %335, %337 : vector<16x32xf32>
    %339 = vector.shape_cast %317 : vector<32xf32> to vector<1x32xf32>
    %340 = vector.broadcast %339 : vector<1x32xf32> to vector<16x32xf32>
    %341 = arith.addf %338, %340 : vector<16x32xf32>
    %c0_78 = arith.constant 0 : index
    %c0_79 = arith.constant 0 : index
    %342 = vector.load %arg7[%c0_78, %c0_79] : memref<32x128xf32, #tpu.memory_space<vmem>>, vector<32x128xf32>
    %cst_80 = arith.constant dense<0.000000e+00> : vector<16x128xf32>
    %343 = tpu.matmul %341, %342, %cst_80 {dimension_numbers = #tpu.dot_dimension_numbers<[1], [0], [0], [1], [0, 0, 1, 1], [], []>} : vector<16x32xf32>, vector<32x128xf32>, vector<16x128xf32> -> vector<16x128xf32>
    %344 = vector.extract_strided_slice %313 {offsets = [2, 0], sizes = [1, 128], strides = [1, 1]} : vector<8x128xf32> to vector<1x128xf32>
    %345 = vector.shape_cast %344 : vector<1x128xf32> to vector<128xf32>
    %346 = vector.shape_cast %345 : vector<128xf32> to vector<1x128xf32>
    %347 = vector.broadcast %346 : vector<1x128xf32> to vector<16x128xf32>
    %348 = arith.addf %343, %347 : vector<16x128xf32>
    %349 = vector.shape_cast %348 : vector<16x128xf32> to vector<2x8x128xf32>
    %c0_81 = arith.constant 0 : index
    %c0_82 = arith.constant 0 : index
    %c0_83 = arith.constant 0 : index
    %350 = vector.load %arg8[%c0_81, %c0_82, %c0_83] : memref<2x8x128xf32, #tpu.memory_space<vmem>>, vector<2x8x128xf32>
    tpu.vector_store %arg8[%c0_81, %c0_82, %c0_83], %349 {strides = array<i32>} : memref<2x8x128xf32, #tpu.memory_space<vmem>>, vector<2x8x128xf32>,
    return
  }
}

</mosaic_0001>

<bundles_post_ra>
// kernel: gpt_forward.1
= control target key start
LH: loop header
LB: loop body
LE: loop exit
PB: predicated region body
PF: predicated region fallthrough
CT: control target
= control target key end

     0   :  { %vm51_vm0 = vcmask 261120   ;;  %s4135_s0 = inlined_call_operand.vmem [shape: f32[2,8,32], index: 0, kind: input, shape index: {}]   ;;  %s4136_s1 = inlined_call_operand.vmem [shape: f32[2,8,128], index: 1, kind: input, shape index: {}]   ;;  %s4137_s2 = inlined_call_operand.vmem [shape: f32[2,32,96], index: 2, kind: input, shape index: {}]   ;;  %s4138_s3 = inlined_call_operand.vmem [shape: f32[2,32,32], index: 3, kind: input, shape index: {}]   ;;  %s4139_s4 = inlined_call_operand.vmem [shape: f32[2,32,128], index: 4, kind: input, shape index: {}]   ;;  %s4140_s5 = inlined_call_operand.vmem [shape: f32[2,128,32], index: 5, kind: input, shape index: {}]   ;;  %s4141_s6 = inlined_call_operand.vmem [shape: f32[8,128], index: 6, kind: input, shape index: {}]   ;;  %s4142_s7 = inlined_call_operand.vmem [shape: f32[32,128], index: 7, kind: input, shape index: {}]   ;;  %s4143_s8 = inlined_call_operand.hbm [shape: f32[2,8,128], index: 8, kind: output, shape index: {}]  }
   0x1   :  { %v3451_v0 = vld [vmem:[%s4135_s0] sm:$0xff]  ;;  %v3456_v1 = vld [vmem:[%s4135_s0 + $0x8] sm:$0xff] }
   0x2   :  { %13 = vsyncpa [#allocation3], 0  ;;  %v52_v2 = vsel %vm51_vm0, %v3451_v0, 0.0  ;;  %v55_v3 = vsel %vm51_vm0, %v3456_v1, 0.0  ;;  %v94_v14 = vld [vmem:[%s4137_s2 + $0x18] sm:$0xff]  ;;  %v93_v15 = vld [vmem:[%s4137_s2 + $0x10] sm:$0xff]  ;;  %v32_v23 = vlaneseq }
   0x3   :  { %53 = vadd.xlane.f32.xlu0 %v52_v2  ;;  %3018 = vmatprep.subr.mxu1 %v94_v14  ;;  %v92_v16 = vld [vmem:[%s4137_s2 + $0x8] sm:$0xff]  ;;  %v91_v17 = vld [vmem:[%s4137_s2] sm:$0xff]  ;;  %vm198_vm1 = vcmask 64512   ;;  %s3393_s18 = smov 112   ;;  %s3394_s19 = smov 120   ;;  %vm563_vm7 = vcmask 130048  }
   0x4   :  { %3019 = vmatpush3.msra.mxu1 %v94_v14  ;;  %v3479_v25 = vshrl.u32 %v32_v23, 7  ;;  %v3487_v27 = vld [vmem:[%s4136_s1] sm:$0xff]  ;;  %s3395_s20 = smov 104   ;;  %s3396_s21 = smov 96   ;;  %v36_v60 = vand.u32 127, %v32_v23  ;;  %vm1028_vm9 = vcmask 195584  }
   0x5   :  { %3020 = vmatprep.subr.mxu1 %v93_v15  ;;  %s3397_s22 = smov 64   ;;  %s3398_s0 = smov 8  }
   0x6   :  { %3021 = vmatpush3.msra.mxu1 %v93_v15  ;;  %v3482_v26 = vsub.s32 0, %v3479_v25  ;;  %v3490_v28 = vsub.s32 1, %v3479_v25  ;;  %v3499_v39 = vsub.s32 2, %v3479_v25  ;;  %v34_v59 = vadd.s32 8, %v3479_v25  ;;  %s3399_s9 = smov 16   ;;  %s3400_s10 = smov 24  }
   0x7   :  { %56 = vadd.xlane.f32.xlu0 %v55_v3  ;;  %3022 = vmatprep.subr.mxu1 %v92_v16  ;;  %v39_v62 = vshra.s32 %v36_v60, 3  ;;  %v42_v2 = vand.u32 7, %v36_v60  ;;  %v37_v3 = vshra.s32 %v3479_v25, 3 }
   0x8   :  { %3023 = vmatpush3.msra.mxu1 %v92_v16  ;;  %v82_v29 = vrot.slane %v3487_v27, %v3482_v26  ;;  %v88_v32 = vrot.slane %v3487_v27, %v3490_v28  ;;  %v98_v40 = vrot.slane %v3487_v27, %v3499_v39  ;;  %v38_v61 = vshra.s32 %v34_v59, 3 }
   0x9   :  { %3024 = vmatprep.subr.mxu1 %v91_v17  ;;  %v41_v63 = vand.u32 7, %v34_v59  ;;  %vm43_vm4 = vcmp.eq.s32.totalorder %v37_v3, %v39_v62 }
   0xa   :  { %3025 = vmatpush3.msra.mxu1 %v91_v17  ;;  %vm44_vm2 = vcmp.eq.s32.totalorder %v38_v61, %v39_v62 }
   0xb   :  { %vm46_vm3 = vcmp.le.s32.totalorder %v42_v2, %v41_v63 }
   0xc   :  { %vm3583_vm6 = vmand %vm44_vm2, %vm46_vm3 }
  0x8c   :  { %v54_v4 = vpop.xlane.xlu0 %53 }
  0x8d   :  { %v59_v5 = vmul.f32 0.03125, %v54_v4  ;;  %v40_v4 = vand.u32 7, %v3479_v25 }
  0x8f   :  { %v61_v6 = vsub.f32 %v3451_v0, %v59_v5  ;;  %vm45_vm5 = vcmp.le.s32.totalorder %v42_v2, %v40_v4 }
  0x90   :  { %v57_v7 = vpop.xlane.xlu0 %56  ;;  %vm3587_vm8 = vmand %vm43_vm4, %vm45_vm5 }
  0x91   :  { %v60_v8 = vmul.f32 0.03125, %v57_v7  ;;  %v63_v9 = vmul.f32 %v61_v6, %v61_v6 }
  0x93   :  { %v62_v10 = vsub.f32 %v3456_v1, %v60_v8  ;;  %v65_v11 = vsel %vm51_vm0, %v63_v9, 0.0 }
  0x94   :  { %66 = vadd.xlane.f32.xlu1 %v65_v11 }
  0x95   :  { %v64_v12 = vmul.f32 %v62_v10, %v62_v10 }
  0x97   :  { %v68_v13 = vsel %vm51_vm0, %v64_v12, 0.0 }
  0x98   :  { %69 = vadd.xlane.f32.xlu1 %v68_v13 }
 0x11d   :  { %v67_v18 = vpop.xlane.xlu1 %66 }
 0x11e   :  { %v71_v19 = vmul.f32 0.03125, %v67_v18 }
 0x120   :  { %v73_v20 = vadd.f32 1e-05, %v71_v19 }
 0x121   :  { %v70_v21 = vpop.xlane.xlu1 %69 }
 0x122   :  { %3287 = vrsqrt.f32 %v73_v20  ;;  %v72_v22 = vmul.f32 0.03125, %v70_v21 }
 0x124   :  { %v74_v24 = vadd.f32 1e-05, %v72_v22 }
 0x126   :  { %3289 = vrsqrt.f32 %v74_v24 }
 0x12f   :  { %v3288_v30 = vpop.eup %3287 }
 0x130   :  { %v77_v31 = vmul.f32 %v3288_v30, %v61_v6 }
 0x132   :  { %v83_v33 = vmul.f32 %v82_v29, %v77_v31 }
 0x133   :  { %v3290_v34 = vpop.eup %3289 }
 0x134   :  { %v78_v35 = vmul.f32 %v3290_v34, %v62_v10  ;;  %v89_v36 = vadd.f32 %v88_v32, %v83_v33 }
 0x136   :  { %v84_v37 = vmul.f32 %v82_v29, %v78_v35  ;;  %3026 = vmatprep.mubr.msk.f32.mxu1 %vm51_vm0, %v89_v36 }
 0x138   :  { %v90_v38 = vadd.f32 %v88_v32, %v84_v37 }
 0x13a   :  { %3027 = vmatmul.mubr.msk.f32.vlgmr.msra.gmra.mxu1 %vm51_vm0, %v90_v38 }
 0x1fa   :  { %v3028_v41 = vpop.f32.mrf.mxu1 }
 0x1fb   :  { %v3503_v42 = vadd.f32 %v3028_v41, %v98_v40 }
 0x1fc   :  { %v171_v43 = vpop.f32.mrf.mxu1 }
 0x1fd   :  { %v3505_v44 = vadd.f32 %v171_v43, %v98_v40  ;;  %188 = vrot.lane.b32.xlu1 %v3503_v42, %s3393_s18  ;;  %184 = vrot.lane.b32.xlu0 %v3503_v42, %s3394_s19 }
 0x1ff   :  { %3033 = vmatprep.mubr.msk.f32.mxu1 %vm198_vm1, %v3505_v44 }
 0x201   :  { %192 = vrot.lane.b32.xlu0 %v3503_v42, %s3395_s20  ;;  %182 = vrot.lane.b32.xlu1 %v3505_v44, %s3394_s19 }
 0x205   :  { %196 = vrot.lane.b32.xlu0 %v3503_v42, %s3396_s21  ;;  %186 = vrot.lane.b32.xlu1 %v3505_v44, %s3393_s18 }
 0x209   :  { %190 = vrot.lane.b32.xlu1 %v3505_v44, %s3395_s20 }
 0x20d   :  { %194 = vrot.lane.b32.xlu1 %v3505_v44, %s3396_s21 }
 0x26f   :  { %v3525_v45 = vpop.permute.xlu1 %188  ;;  %v3527_v46 = vpop.permute.xlu0 %184 }
 0x270   :  { %284 = vrot.lane.b32.xlu0 %v3527_v46, %s3396_s21 }
 0x273   :  { %v3531_v47 = vpop.permute.xlu0 %192  ;;  %v3533_v48 = vpop.permute.xlu1 %182 }
 0x274   :  { %371 = vrot.lane.b32.xlu0 %v3525_v45, %s3396_s21  ;;  %3040 = vmatprep.mubr.msk.f32.mxu0 %vm198_vm1, %v3533_v48 }
 0x275   :  { %282 = vrot.lane.b32.xlu1 %v3533_v48, %s3396_s21 }
 0x277   :  { %v197_v49 = vpop.permute.xlu0 %196  ;;  %v3541_v50 = vpop.permute.xlu1 %186 }
 0x278   :  { %458 = vrot.lane.b32.xlu0 %v3531_v47, %s3396_s21  ;;  %3029 = vmatprep.subr.msk.mxu1 %vm198_vm1, %v197_v49 }
 0x279   :  { %369 = vrot.lane.b32.xlu1 %v3541_v50, %s3396_s21  ;;  %3030 = vmatpush3.xpose.msk.msra.mxu1 %vm198_vm1, %v197_v49 }
 0x27b   :  { %v3549_v51 = vpop.permute.xlu1 %190 }
 0x27d   :  { %456 = vrot.lane.b32.xlu1 %v3549_v51, %s3396_s21 }
 0x27f   :  { %v195_v52 = vpop.permute.xlu1 %194 }
 0x280   :  { %3031 = vmatprep.subr.msk.mxu1 %vm198_vm1, %v195_v52 }
 0x281   :  { %3032 = vmatpush3.xpose.msk.msra.mxu1 %vm198_vm1, %v195_v52 }
 0x284   :  { %3034 = vmatmul.mubr.msk.f32.vlgmr.msra.gmra.mxu1 %vm198_vm1, %v3503_v42 }
 0x285   :  { %3047 = vmatprep.mubr.msk.f32.mxu1 %vm198_vm1, %v3541_v50 }
 0x2e2   :  { %v285_v53 = vpop.permute.xlu0 %284 }
 0x2e3   :  { %3036 = vmatprep.subr.msk.mxu0 %vm198_vm1, %v285_v53 }
 0x2e4   :  { %3037 = vmatpush3.xpose.msk.msra.mxu0 %vm198_vm1, %v285_v53 }
 0x2e6   :  { %v372_v54 = vpop.permute.xlu0 %371 }
 0x2e7   :  { %v283_v55 = vpop.permute.xlu1 %282  ;;  %3043 = vmatprep.subr.msk.mxu1 %vm198_vm1, %v372_v54 }
 0x2e8   :  { %3038 = vmatprep.subr.msk.mxu0 %vm198_vm1, %v283_v55  ;;  %3044 = vmatpush3.xpose.msk.msra.mxu1 %vm198_vm1, %v372_v54 }
 0x2e9   :  { %3039 = vmatpush3.xpose.msk.msra.mxu0 %vm198_vm1, %v283_v55 }
 0x2ea   :  { %v459_v56 = vpop.permute.xlu0 %458 }
 0x2eb   :  { %v370_v57 = vpop.permute.xlu1 %369  ;;  %3050 = vmatprep.subr.msk.mxu0 %vm198_vm1, %v459_v56 }
 0x2ec   :  { %3041 = vmatmul.mubr.msk.f32.vlgmr.msra.gmra.mxu0 %vm198_vm1, %v3527_v46  ;;  %3045 = vmatprep.subr.msk.mxu1 %vm198_vm1, %v370_v57 }
 0x2ed   :  { %3046 = vmatpush3.xpose.msk.msra.mxu1 %vm198_vm1, %v370_v57  ;;  %3051 = vmatpush3.xpose.msk.msra.mxu0 %vm198_vm1, %v459_v56 }
 0x2ee   :  { %3054 = vmatprep.mubr.msk.f32.mxu0 %vm198_vm1, %v3549_v51 }
 0x2ef   :  { %v457_v58 = vpop.permute.xlu1 %456 }
 0x2f0   :  { %3048 = vmatmul.mubr.msk.f32.vlgmr.msra.gmra.mxu1 %vm198_vm1, %v3525_v45  ;;  %3052 = vmatprep.subr.msk.mxu0 %vm198_vm1, %v457_v58 }
 0x2f1   :  { %3053 = vmatpush3.xpose.msk.msra.mxu0 %vm198_vm1, %v457_v58 }
 0x2f4   :  { %3055 = vmatmul.mubr.msk.f32.vlgmr.msra.gmra.mxu0 %vm198_vm1, %v3531_v47 }
 0x344   :  { %v3035_v5 = vpop.f32.mrf.mxu1 }
 0x345   :  { %v544_v7 = vmul.f32 0.35355338, %v3035_v5 }
 0x346   :  { %v273_v8 = vpop.f32.mrf.mxu1 }
 0x347   :  { %v543_v10 = vmul.f32 0.35355338, %v273_v8  ;;  %v556_v11 = vsel %vm3583_vm6, %v544_v7, -1e+30 }
 0x348   :  { %v567_v12 = vsel %vm563_vm7, %v556_v11, -inf }
 0x349   :  { %568 = vmax.xlane.f32.xlu1 %v567_v12  ;;  %v555_v13 = vsel %vm3587_vm8, %v543_v10, -1e+30 }
 0x34a   :  { %v564_v14 = vsel %vm563_vm7, %v555_v13, -inf }
 0x34b   :  { %565 = vmax.xlane.f32.xlu0 %v564_v14 }
 0x3ac   :  { %v3042_v15 = vpop.f32.mrf.mxu0 }
 0x3ad   :  { %v546_v16 = vmul.f32 0.35355338, %v3042_v15 }
 0x3ae   :  { %v360_v17 = vpop.f32.mrf.mxu0 }
 0x3af   :  { %v545_v18 = vmul.f32 0.35355338, %v360_v17  ;;  %v558_v19 = vsel %vm3583_vm6, %v546_v16, -1e+30 }
 0x3b0   :  { %v3049_v20 = vpop.f32.mrf.mxu1  ;;  %v573_v21 = vsel %vm563_vm7, %v558_v19, -inf }
 0x3b1   :  { %v548_v22 = vmul.f32 0.35355338, %v3049_v20  ;;  %574 = vmax.xlane.f32.xlu0 %v573_v21  ;;  %v557_v23 = vsel %vm3587_vm8, %v545_v18, -1e+30 }
 0x3b2   :  { %v447_v24 = vpop.f32.mrf.mxu1  ;;  %v570_v32 = vsel %vm563_vm7, %v557_v23, -inf }
 0x3b3   :  { %v547_v29 = vmul.f32 0.35355338, %v447_v24  ;;  %v560_v30 = vsel %vm3583_vm6, %v548_v22, -1e+30 }
 0x3b4   :  { %v3056_v31 = vpop.f32.mrf.mxu0  ;;  %v579_v33 = vsel %vm563_vm7, %v560_v30, -inf }
 0x3b5   :  { %v550_v34 = vmul.f32 0.35355338, %v3056_v31  ;;  %571 = vmax.xlane.f32.xlu0 %v570_v32  ;;  %580 = vmax.xlane.f32.xlu1 %v579_v33  ;;  %v559_v35 = vsel %vm3587_vm8, %v547_v29, -1e+30 }
 0x3b6   :  { %v534_v36 = vpop.f32.mrf.mxu0  ;;  %v576_v41 = vsel %vm563_vm7, %v559_v35, -inf }
 0x3b7   :  { %v549_v37 = vmul.f32 0.35355338, %v534_v36  ;;  %v562_v38 = vsel %vm3583_vm6, %v550_v34, -1e+30 }
 0x3b8   :  { %v585_v40 = vsel %vm563_vm7, %v562_v38, -inf }
 0x3b9   :  { %586 = vmax.xlane.f32.xlu1 %v585_v40  ;;  %577 = vmax.xlane.f32.xlu0 %v576_v41  ;;  %v561_v43 = vsel %vm3587_vm8, %v549_v37, -1e+30 }
 0x3ba   :  { %v582_v49 = vsel %vm563_vm7, %v561_v43, -inf }
 0x3bd   :  { %583 = vmax.xlane.f32.xlu0 %v582_v49 }
 0x3ca   :  { %652 = vrot.lane.b32.xlu1 %v3505_v44, %s3397_s22 }
 0x3ce   :  { %741 = vrot.lane.b32.xlu1 %v3527_v46, %s3397_s22 }
 0x3d2   :  { %739 = vrot.lane.b32.xlu1 %v3533_v48, %s3397_s22  ;;  %v569_v54 = vpop.xlane.xlu1 %568 }
 0x3d3   :  { %654 = vrot.lane.b32.xlu0 %v3503_v42, %s3397_s22  ;;  %v589_v55 = vsub.f32 %v556_v11, %v569_v54 }
 0x3d4   :  { %v566_v52 = vpop.xlane.xlu0 %565 }
 0x3d5   :  { %v588_v53 = vsub.f32 %v555_v13, %v566_v52  ;;  %v598_v56 = vmul.f32 1.442695, %v589_v55 }
 0x3d6   :  { %826 = vrot.lane.b32.xlu1 %v3541_v50, %s3397_s22 }
 0x3d7   :  { %828 = vrot.lane.b32.xlu0 %v3525_v45, %s3397_s22  ;;  %v596_v44 = vmul.f32 1.442695, %v588_v53 }
 0x3d9   :  { %3291 = vpow2.f32 %v596_v44 }
 0x3da   :  { %3293 = vpow2.f32 %v598_v56 }
 0x3e6   :  { %v3627_v46 = vpop.eup %3291 }
 0x3e7   :  { %v612_v48 = vsel %vm563_vm7, %v3627_v46, 0.0  ;;  %v3631_v42 = vpop.eup %3293 }
 0x3e8   :  { %v615_v50 = vsel %vm563_vm7, %v3631_v42, 0.0 }
 0x3f6   :  { %613 = vadd.xlane.f32.xlu0 %v612_v48 }
 0x3fa   :  { %616 = vadd.xlane.f32.xlu1 %v615_v50 }
 0x43a   :  { %v575_v45 = vpop.xlane.xlu0 %574 }
 0x43b   :  { %v591_v57 = vsub.f32 %v558_v19, %v575_v45 }
 0x43d   :  { %v602_v58 = vmul.f32 1.442695, %v591_v57 }
 0x43e   :  { %v572_v59 = vpop.xlane.xlu0 %571  ;;  %v581_v60 = vpop.xlane.xlu1 %580 }
 0x43f   :  { %3295 = vpow2.f32 %v602_v58  ;;  %v590_v61 = vsub.f32 %v557_v23, %v572_v59  ;;  %v593_v62 = vsub.f32 %v560_v30, %v581_v60 }
 0x441   :  { %v600_v63 = vmul.f32 1.442695, %v590_v61  ;;  %v606_v2 = vmul.f32 1.442695, %v593_v62 }
 0x442   :  { %v587_v3 = vpop.xlane.xlu1 %586  ;;  %v578_v4 = vpop.xlane.xlu0 %577 }
 0x443   :  { %3297 = vpow2.f32 %v600_v63  ;;  %v595_v5 = vsub.f32 %v562_v38, %v587_v3  ;;  %v592_v7 = vsub.f32 %v559_v35, %v578_v4  ;;  %v1033_v3 = vld [vmem:[%s4138_s3 + $0x10] sm:$0xff] }
 0x444   :  { %3299 = vpow2.f32 %v606_v2  ;;  %v1034_v2 = vld [vmem:[%s4138_s3 + $0x18] sm:$0xff] }
 0x445   :  { %v610_v8 = vmul.f32 1.442695, %v595_v5  ;;  %v604_v10 = vmul.f32 1.442695, %v592_v7  ;;  %3085 = vmatprep.subr.mxu0 %v1034_v2  ;;  %v1032_v5 = vld [vmem:[%s4138_s3 + $0x8] sm:$0xff] }
 0x446   :  { %v584_v11 = vpop.xlane.xlu0 %583  ;;  %v653_v13 = vpop.permute.xlu1 %652  ;;  %3086 = vmatpush3.msra.mxu0 %v1034_v2  ;;  %v1256_v2 = vld [vmem:[%s4140_s5 + $0x28] sm:$0xff] }
 0x447   :  { %3301 = vpow2.f32 %v610_v8  ;;  %v594_v12 = vsub.f32 %v561_v43, %v584_v11  ;;  %3087 = vmatprep.subr.mxu0 %v1033_v3  ;;  %v1031_v8 = vld [vmem:[%s4138_s3] sm:$0xff] }
 0x448   :  { %3303 = vpow2.f32 %v604_v10  ;;  %3088 = vmatpush3.msra.mxu0 %v1033_v3  ;;  %v1255_v3 = vld [vmem:[%s4140_s5 + $0x20] sm:$0xff] }
 0x449   :  { %v608_v14 = vmul.f32 1.442695, %v594_v12  ;;  %3089 = vmatprep.subr.mxu0 %v1032_v5 }
 0x44a   :  { %v655_v15 = vpop.permute.xlu0 %654  ;;  %v742_v18 = vpop.permute.xlu1 %741  ;;  %3090 = vmatpush3.msra.mxu0 %v1032_v5 }
 0x44b   :  { %3305 = vpow2.f32 %v608_v14  ;;  %3057 = vmatprep.subr.mxu1 %v655_v15  ;;  %3091 = vmatprep.subr.mxu0 %v1031_v8 }
 0x44c   :  { %v3296_v16 = vpop.eup %3295  ;;  %3058 = vmatpush3.msra.mxu1 %v655_v15  ;;  %3092 = vmatpush3.msra.mxu0 %v1031_v8 }
 0x44d   :  { %3059 = vmatprep.subr.mxu1 %v653_v13  ;;  %v621_v17 = vsel %vm563_vm7, %v3296_v16, 0.0 }
 0x44e   :  { %622 = vadd.xlane.f32.xlu1 %v621_v17  ;;  %3060 = vmatpush3.msra.mxu1 %v653_v13  ;;  %v740_v33 = vpop.permute.xlu1 %739  ;;  %v829_v34 = vpop.permute.xlu0 %828 }
 0x44f   :  { %3064 = vmatprep.subr.mxu1 %v742_v18 }
 0x450   :  { %v3298_v19 = vpop.eup %3297 }
 0x451   :  { %v3300_v20 = vpop.eup %3299  ;;  %v618_v21 = vsel %vm563_vm7, %v3298_v19, 0.0 }
 0x452   :  { %v627_v22 = vsel %vm563_vm7, %v3300_v20, 0.0  ;;  %619 = vadd.xlane.f32.xlu0 %v618_v21  ;;  %v827_v35 = vpop.permute.xlu1 %826 }
 0x453   :  { %628 = vadd.xlane.f32.xlu1 %v627_v22 }
 0x454   :  { %v3638_v23 = vpop.eup %3301 }
 0x455   :  { %v3304_v24 = vpop.eup %3303  ;;  %v633_v29 = vsel %vm563_vm7, %v3638_v23, 0.0 }
 0x456   :  { %v624_v30 = vsel %vm563_vm7, %v3304_v24, 0.0 }
 0x457   :  { %634 = vadd.xlane.f32.xlu1 %v633_v29  ;;  %625 = vadd.xlane.f32.xlu0 %v624_v30 }
 0x458   :  { %v3306_v31 = vpop.eup %3305 }
 0x459   :  { %v630_v32 = vsel %vm563_vm7, %v3306_v31, 0.0 }
 0x45b   :  { %631 = vadd.xlane.f32.xlu0 %v630_v32 }
 0x468   :  { %913 = vrot.lane.b32.xlu1 %v3549_v51, %s3397_s22 }
 0x471   :  { %915 = vrot.lane.b32.xlu0 %v3531_v47, %s3397_s22 }
 0x47f   :  { %v614_v36 = vpop.xlane.xlu0 %613 }
 0x480   :  { %3307 = vrcp.f32 %v614_v36 }
 0x483   :  { %v617_v37 = vpop.xlane.xlu1 %616 }
 0x484   :  { %3309 = vrcp.f32 %v617_v37 }
 0x48d   :  { %v3308_v38 = vpop.eup %3307 }
 0x48e   :  { %v644_v40 = vmul.f32 %v3308_v38, %v3627_v46 }
 0x490   :  { %3061 = vmatprep.mubr.msk.f32.mxu1 %vm563_vm7, %v644_v40 }
 0x491   :  { %v3310_v41 = vpop.eup %3309 }
 0x492   :  { %v645_v43 = vmul.f32 %v3310_v41, %v3631_v42 }
 0x494   :  { %3062 = vmatmul.mubr.msk.f32.vlgmr.msra.gmra.mxu1 %vm563_vm7, %v645_v43 }
 0x495   :  { %3065 = vmatpush3.msra.mxu1 %v742_v18 }
 0x496   :  { %3066 = vmatprep.subr.mxu1 %v740_v33 }
 0x497   :  { %3067 = vmatpush3.msra.mxu1 %v740_v33 }
 0x498   :  { %3071 = vmatprep.subr.mxu1 %v829_v34 }
 0x4d7   :  { %v623_v47 = vpop.xlane.xlu1 %622 }
 0x4d8   :  { %3311 = vrcp.f32 %v623_v47 }
 0x4db   :  { %v620_v51 = vpop.xlane.xlu0 %619 }
 0x4dc   :  { %v629_v49 = vpop.xlane.xlu1 %628  ;;  %3313 = vrcp.f32 %v620_v51 }
 0x4dd   :  { %3315 = vrcp.f32 %v629_v49 }
 0x4e0   :  { %v626_v52 = vpop.xlane.xlu0 %625  ;;  %v635_v53 = vpop.xlane.xlu1 %634 }
 0x4e1   :  { %3317 = vrcp.f32 %v626_v52 }
 0x4e2   :  { %3319 = vrcp.f32 %v635_v53 }
 0x4e4   :  { %v632_v54 = vpop.xlane.xlu0 %631  ;;  %v914_v61 = vpop.permute.xlu1 %913 }
 0x4e5   :  { %3321 = vrcp.f32 %v632_v54  ;;  %v3312_v55 = vpop.eup %3311 }
 0x4e6   :  { %v647_v46 = vmul.f32 %v3312_v55, %v3296_v16 }
 0x4e8   :  { %v916_v50 = vpop.permute.xlu0 %915 }
 0x4e9   :  { %v3314_v44 = vpop.eup %3313 }
 0x4ea   :  { %v646_v56 = vmul.f32 %v3314_v44, %v3298_v19  ;;  %v3316_v48 = vpop.eup %3315  ;;  %v1163_v44 = vld [vmem:[%s4139_s4 + $0x18] sm:$0xff] }
 0x4eb   :  { %v649_v58 = vmul.f32 %v3316_v48, %v3300_v20  ;;  %v1160_v48 = vld [vmem:[%s4139_s4] sm:$0xff] }
 0x4ec   :  { %3068 = vmatprep.mubr.msk.f32.mxu1 %vm563_vm7, %v646_v56  ;;  %v1162_v56 = vld [vmem:[%s4139_s4 + $0x10] sm:$0xff] }
 0x4ed   :  { %3069 = vmatmul.mubr.msk.f32.vlgmr.msra.gmra.mxu1 %vm563_vm7, %v647_v46  ;;  %v1161_v46 = vld [vmem:[%s4139_s4 + $0x8] sm:$0xff] }
 0x4ee   :  { %3072 = vmatpush3.msra.mxu1 %v829_v34  ;;  %v3318_v42 = vpop.eup %3317 }
 0x4ef   :  { %3073 = vmatprep.subr.mxu1 %v827_v35  ;;  %v648_v45 = vmul.f32 %v3318_v42, %v3304_v24  ;;  %v3320_v57 = vpop.eup %3319  ;;  %v1266_v42 = vld [vmem:[%s4140_s5 + $0x78] sm:$0xff] }
 0x4f0   :  { %3074 = vmatpush3.msra.mxu1 %v827_v35  ;;  %v651_v62 = vmul.f32 %v3320_v57, %v3638_v23  ;;  %3107 = vmatprep.subr.mxu0 %v1266_v42  ;;  %v1263_v57 = vld [vmem:[%s4140_s5 + $0x60] sm:$0xff] }
 0x4f1   :  { %3078 = vmatprep.subr.mxu1 %v916_v50  ;;  %3075 = vmatprep.mubr.msk.f32.mxu1 %vm563_vm7, %v648_v45  ;;  %v1264_v45 = vld [vmem:[%s4140_s5 + $0x68] sm:$0xff] }
 0x4f2   :  { %v3322_v59 = vpop.eup %3321  ;;  %3076 = vmatmul.mubr.msk.f32.vlgmr.msra.gmra.mxu1 %vm563_vm7, %v649_v58  ;;  %v1262_v58 = vld [vmem:[%s4140_s5 + $0x58] sm:$0xff] }
 0x4f3   :  { %v650_v60 = vmul.f32 %v3322_v59, %v3306_v31  ;;  %3079 = vmatpush3.msra.mxu1 %v916_v50  ;;  %v1037_v31 = vsub.s32 3, %v3479_v25  ;;  %v1265_v50 = vld [vmem:[%s4140_s5 + $0x70] sm:$0xff] }
 0x4f4   :  { %3080 = vmatprep.subr.mxu1 %v914_v61  ;;  %v1261_v59 = vld [vmem:[%s4140_s5 + $0x50] sm:$0xff] }
 0x4f5   :  { %3082 = vmatprep.mubr.msk.f32.mxu1 %vm563_vm7, %v650_v60  ;;  %3081 = vmatpush3.msra.mxu1 %v914_v61  ;;  %v1038_v32 = vrot.slane %v3487_v27, %v1037_v31  ;;  %v1260_v60 = vld [vmem:[%s4140_s5 + $0x48] sm:$0xff]  ;;  %v1259_v61 = vld [vmem:[%s4140_s5 + $0x40] sm:$0xff] }
 0x4f6   :  { %3083 = vmatmul.mubr.msk.f32.vlgmr.msra.gmra.mxu1 %vm563_vm7, %v651_v62  ;;  %3096 = vmatprep.subr.mxu1 %v1163_v44  ;;  %v1258_v62 = vld [vmem:[%s4140_s5 + $0x38] sm:$0xff] }
 0x4f7   :  { %3097 = vmatpush3.msra.mxu1 %v1163_v44 }
 0x4f8   :  { %3098 = vmatprep.subr.mxu1 %v1162_v56 }
 0x4f9   :  { %3099 = vmatpush3.msra.mxu1 %v1162_v56 }
 0x4fa   :  { %3100 = vmatprep.subr.mxu1 %v1161_v46 }
 0x4fb   :  { %3101 = vmatpush3.msra.mxu1 %v1161_v46 }
 0x4fc   :  { %3102 = vmatprep.subr.mxu1 %v1160_v48 }
 0x4fd   :  { %3103 = vmatpush3.msra.mxu1 %v1160_v48 }
 0x554   :  { %v3063_v63 = vpop.f32.mrf.mxu1 }
 0x556   :  { %v730_v4 = vpop.f32.mrf.mxu1 }
 0x5ad   :  { %v3070_v7 = vpop.f32.mrf.mxu1 }
 0x5ae   :  { %1004 = vrot.lane.b32.xlu1 %v3070_v7, %s3398_s0 }
 0x5af   :  { %v817_v10 = vpop.f32.mrf.mxu1 }
 0x5b0   :  { %1002 = vrot.lane.b32.xlu0 %v817_v10, %s3398_s0 }
 0x5b2   :  { %v3077_v11 = vpop.f32.mrf.mxu1 }
 0x5b3   :  { %1012 = vrot.lane.b32.xlu1 %v3077_v11, %s3399_s9 }
 0x5b4   :  { %v904_v12 = vpop.f32.mrf.mxu1 }
 0x5b5   :  { %1010 = vrot.lane.b32.xlu0 %v904_v12, %s3399_s9  ;;  %v1150_v12 = vsub.s32 4, %v3479_v25 }
 0x5b6   :  { %v3084_v13 = vpop.f32.mrf.mxu1 }
 0x5b7   :  { %1020 = vrot.lane.b32.xlu1 %v3084_v13, %s3400_s10  ;;  %v1156_v13 = vsub.s32 5, %v3479_v25 }
 0x5b8   :  { %v991_v14 = vpop.f32.mrf.mxu1 }
 0x5b9   :  { %1018 = vrot.lane.b32.xlu0 %v991_v14, %s3400_s10  ;;  %v1151_v14 = vrot.slane %v3487_v27, %v1150_v12 }
 0x620   :  { %v1005_v15 = vpop.permute.xlu1 %1004 }
 0x621   :  { %v1025_v21 = vsel %vm198_vm1, %v3063_v63, %v1005_v15  ;;  %v1257_v63 = vld [vmem:[%s4140_s5 + $0x30] sm:$0xff] }
 0x622   :  { %v1003_v16 = vpop.permute.xlu0 %1002 }
 0x623   :  { %v1024_v19 = vsel %vm198_vm1, %v730_v4, %v1003_v16 }
 0x625   :  { %v1013_v17 = vpop.permute.xlu1 %1012 }
 0x626   :  { %v1027_v24 = vsel %vm563_vm7, %v1025_v21, %v1013_v17  ;;  %v1157_v17 = vrot.slane %v3487_v27, %v1156_v13 }
 0x627   :  { %v1011_v18 = vpop.permute.xlu0 %1010 }
 0x628   :  { %v1026_v22 = vsel %vm563_vm7, %v1024_v19, %v1011_v18 }
 0x629   :  { %v1021_v20 = vpop.permute.xlu1 %1020 }
 0x62a   :  { %v1030_v30 = vsel %vm1028_vm9, %v1027_v24, %v1021_v20  ;;  %v1254_v24 = vld [vmem:[%s4140_s5 + $0x18] sm:$0xff] }
 0x62b   :  { %v1019_v23 = vpop.permute.xlu0 %1018 }
 0x62c   :  { %v1029_v29 = vsel %vm1028_vm9, %v1026_v22, %v1019_v23 }
 0x62d   :  { %3093 = vmatprep.mubr.msk.f32.mxu0 %vm51_vm0, %v1029_v29  ;;  %v1253_v29 = vld [vmem:[%s4140_s5 + $0x10] sm:$0xff] }
 0x62e   :  { %3094 = vmatmul.mubr.msk.f32.vlgmr.msra.gmra.mxu0 %vm51_vm0, %v1030_v30  ;;  %v1252_v30 = vld [vmem:[%s4140_s5 + $0x8] sm:$0xff] }
 0x62f   :  { %3108 = vmatpush3.msra.mxu0 %v1266_v42 }
 0x630   :  { %3109 = vmatprep.subr.mxu0 %v1265_v50 }
 0x631   :  { %3110 = vmatpush3.msra.mxu0 %v1265_v50 }
 0x632   :  { %3111 = vmatprep.subr.mxu0 %v1264_v45 }
 0x633   :  { %3112 = vmatpush3.msra.mxu0 %v1264_v45 }
 0x634   :  { %3113 = vmatprep.subr.mxu0 %v1263_v57 }
 0x635   :  { %3114 = vmatpush3.msra.mxu0 %v1263_v57 }
 0x636   :  { %3115 = vmatprep.subr.mxu0 %v1262_v58 }
 0x637   :  { %3116 = vmatpush3.msra.mxu0 %v1262_v58 }
 0x638   :  { %3117 = vmatprep.subr.mxu0 %v1261_v59 }
 0x639   :  { %3118 = vmatpush3.msra.mxu0 %v1261_v59  ;;  %v2819_v59 = vld [vmem:[%s4137_s2 + $0x38] sm:$0xff] }
 0x63a   :  { %3119 = vmatprep.subr.mxu0 %v1260_v60  ;;  %3142 = vmatprep.subr.mxu1 %v2819_v59 }
 0x63b   :  { %3120 = vmatpush3.msra.mxu0 %v1260_v60  ;;  %v2818_v60 = vld [vmem:[%s4137_s2 + $0x30] sm:$0xff] }
 0x63c   :  { %3121 = vmatprep.subr.mxu0 %v1259_v61 }
 0x63d   :  { %3122 = vmatpush3.msra.mxu0 %v1259_v61  ;;  %v2817_v61 = vld [vmem:[%s4137_s2 + $0x28] sm:$0xff] }
 0x63e   :  { %3123 = vmatprep.subr.mxu0 %v1258_v62 }
 0x63f   :  { %3124 = vmatpush3.msra.mxu0 %v1258_v62  ;;  %v2816_v62 = vld [vmem:[%s4137_s2 + $0x20] sm:$0xff] }
 0x640   :  { %3125 = vmatprep.subr.mxu0 %v1257_v63 }
 0x641   :  { %3126 = vmatpush3.msra.mxu0 %v1257_v63 }
 0x642   :  { %3127 = vmatprep.subr.mxu0 %v1256_v2 }
 0x643   :  { %3128 = vmatpush3.msra.mxu0 %v1256_v2 }
 0x644   :  { %3129 = vmatprep.subr.mxu0 %v1255_v3 }
 0x645   :  { %3130 = vmatpush3.msra.mxu0 %v1255_v3 }
 0x646   :  { %3131 = vmatprep.subr.mxu0 %v1254_v24 }
 0x647   :  { %3132 = vmatpush3.msra.mxu0 %v1254_v24 }
 0x648   :  { %3133 = vmatprep.subr.mxu0 %v1253_v29 }
 0x649   :  { %3134 = vmatpush3.msra.mxu0 %v1253_v29 }
 0x64a   :  { %3135 = vmatprep.subr.mxu0 %v1252_v30 }
 0x64b   :  { %3136 = vmatpush3.msra.mxu0 %v1252_v30 }
 0x6ee   :  { %v3095_v33 = vpop.f32.mrf.mxu0 }
 0x6ef   :  { %v1117_v34 = vadd.f32 %v3095_v33, %v1038_v32  ;;  %v1166_v33 = vsub.s32 6, %v3479_v25 }
 0x6f0   :  { %v1111_v35 = vpop.f32.mrf.mxu0 }
 0x6f1   :  { %v3690_v36 = vadd.f32 %v1117_v34, %v3456_v1  ;;  %v1112_v37 = vadd.f32 %v1111_v35, %v1038_v32  ;;  %v1251_v32 = vld [vmem:[%s4140_s5] sm:$0xff]  ;;  %v1167_v34 = vrot.slane %v3487_v27, %v1166_v33 }
 0x6f2   :  { %3137 = vmatprep.subr.mxu0 %v1251_v32 }
 0x6f3   :  { %v3693_v38 = vadd.f32 %v1112_v37, %v3451_v0  ;;  %v1125_v40 = vsel %vm51_vm0, %v3690_v36, 0.0  ;;  %3138 = vmatpush3.msra.mxu0 %v1251_v32 }
 0x6f4   :  { %1126 = vadd.xlane.f32.xlu1 %v1125_v40 }
 0x6f5   :  { %v1122_v41 = vsel %vm51_vm0, %v3693_v38, 0.0 }
 0x6f6   :  { %1123 = vadd.xlane.f32.xlu0 %v1122_v41 }
 0x77d   :  { %v1127_v43 = vpop.xlane.xlu1 %1126 }
 0x77e   :  { %v1129_v47 = vmul.f32 0.03125, %v1127_v43 }
 0x77f   :  { %v1124_v51 = vpop.xlane.xlu0 %1123 }
 0x780   :  { %v1128_v49 = vmul.f32 0.03125, %v1124_v51  ;;  %v3700_v52 = vsub.f32 %v3690_v36, %v1129_v47  ;;  %v1269_v51 = vsub.s32 7, %v3479_v25 }
 0x782   :  { %v3703_v1 = vsub.f32 %v3693_v38, %v1128_v49  ;;  %v1133_v54 = vmul.f32 %v3700_v52, %v3700_v52  ;;  %v1270_v49 = vrot.slane %v3487_v27, %v1269_v51 }
 0x784   :  { %v1132_v0 = vmul.f32 %v3703_v1, %v3703_v1  ;;  %v1137_v55 = vsel %vm51_vm0, %v1133_v54, 0.0 }
 0x786   :  { %v1134_v53 = vsel %vm51_vm0, %v1132_v0, 0.0 }
 0x787   :  { %1135 = vadd.xlane.f32.xlu0 %v1134_v53 }
 0x78b   :  { %1138 = vadd.xlane.f32.xlu0 %v1137_v55 }
 0x810   :  { %v1136_v4 = vpop.xlane.xlu0 %1135 }
 0x811   :  { %v1140_v5 = vmul.f32 0.03125, %v1136_v4 }
 0x813   :  { %v1142_v7 = vadd.f32 1e-05, %v1140_v5 }
 0x814   :  { %v1139_v8 = vpop.xlane.xlu0 %1138 }
 0x815   :  { %3323 = vrsqrt.f32 %v1142_v7  ;;  %v1141_v10 = vmul.f32 0.03125, %v1139_v8  ;;  %v3820_v8 = vld [vmem:[%s4136_s1 + $0x8] sm:$0xff] }
 0x817   :  { %v1143_v11 = vadd.f32 1e-05, %v1141_v10 }
 0x819   :  { %3325 = vrsqrt.f32 %v1143_v11  ;;  %v1377_v11 = vrot.slane %v3820_v8, %v3482_v26 }
 0x822   :  { %v3324_v15 = vpop.eup %3323 }
 0x823   :  { %v1146_v16 = vmul.f32 %v3324_v15, %v3703_v1 }
 0x825   :  { %v1152_v18 = vmul.f32 %v1151_v14, %v1146_v16 }
 0x826   :  { %v3326_v19 = vpop.eup %3325 }
 0x827   :  { %v1147_v20 = vmul.f32 %v3326_v19, %v3700_v52  ;;  %v1158_v21 = vadd.f32 %v1157_v17, %v1152_v18  ;;  %v1383_v18 = vrot.slane %v3820_v8, %v3490_v28 }
 0x829   :  { %v1153_v22 = vmul.f32 %v1151_v14, %v1147_v20  ;;  %3104 = vmatprep.mubr.msk.f32.mxu1 %vm51_vm0, %v1158_v21 }
 0x82b   :  { %v1159_v23 = vadd.f32 %v1157_v17, %v1153_v22  ;;  %v1394_v22 = vrot.slane %v3820_v8, %v3499_v39 }
 0x82d   :  { %3105 = vmatmul.mubr.msk.f32.vlgmr.msra.gmra.mxu1 %vm51_vm0, %v1159_v23 }
 0x82e   :  { %3143 = vmatpush3.msra.mxu1 %v2819_v59 }
 0x82f   :  { %3144 = vmatprep.subr.mxu1 %v2818_v60 }
 0x830   :  { %3145 = vmatpush3.msra.mxu1 %v2818_v60 }
 0x831   :  { %3146 = vmatprep.subr.mxu1 %v2817_v61 }
 0x832   :  { %3147 = vmatpush3.msra.mxu1 %v2817_v61 }
 0x833   :  { %3148 = vmatprep.subr.mxu1 %v2816_v62 }
 0x834   :  { %3149 = vmatpush3.msra.mxu1 %v2816_v62 }
 0x8ed   :  { %v3106_v35 = vpop.f32.mrf.mxu1 }
 0x8ee   :  { %v1246_v37 = vadd.f32 %v3106_v35, %v1167_v34 }
 0x8ef   :  { %v1240_v40 = vpop.f32.mrf.mxu1 }
 0x8f0   :  { %v1241_v41 = vadd.f32 %v1240_v40, %v1167_v34  ;;  %v1250_v47 = vmax.f32 %v1246_v37, 0.0 }
 0x8f2   :  { %v1249_v43 = vmax.f32 %v1241_v41, 0.0 }
 0x8f4   :  { %3139 = vmatprep.mubr.f32.mxu0 %v1249_v43 }
 0x8f5   :  { %3140 = vmatmul.mubr.f32.vlgmr.msra.gmra.mxu0 %v1250_v47 }
 0x9b5   :  { %v3141_v52 = vpop.f32.mrf.mxu0 }
 0x9b6   :  { %v1343_v1 = vadd.f32 %v3141_v52, %v1270_v49 }
 0x9b7   :  { %v1337_v0 = vpop.f32.mrf.mxu0 }
 0x9b8   :  { %v3792_v53 = vadd.f32 %v1343_v1, %v3690_v36  ;;  %v1338_v54 = vadd.f32 %v1337_v0, %v1270_v49 }
 0x9ba   :  { %v3795_v55 = vadd.f32 %v1338_v54, %v3693_v38  ;;  %v1351_v44 = vsel %vm51_vm0, %v3792_v53, 0.0 }
 0x9bb   :  { %1352 = vadd.xlane.f32.xlu1 %v1351_v44 }
 0x9bc   :  { %v1348_v56 = vsel %vm51_vm0, %v3795_v55, 0.0 }
 0x9bd   :  { %1349 = vadd.xlane.f32.xlu0 %v1348_v56 }
 0xa44   :  { %v1353_v46 = vpop.xlane.xlu1 %1352 }
 0xa45   :  { %v1355_v27 = vmul.f32 0.03125, %v1353_v46 }
 0xa46   :  { %v1350_v48 = vpop.xlane.xlu0 %1349 }
 0xa47   :  { %v1357_v42 = vsub.f32 %v3792_v53, %v1355_v27  ;;  %v1354_v50 = vmul.f32 0.03125, %v1350_v48 }
 0xa49   :  { %v1356_v36 = vsub.f32 %v3795_v55, %v1354_v50  ;;  %v1359_v45 = vmul.f32 %v1357_v42, %v1357_v42 }
 0xa4b   :  { %v1363_v38 = vsel %vm51_vm0, %v1359_v45, 0.0  ;;  %v1358_v57 = vmul.f32 %v1356_v36, %v1356_v36 }
 0xa4c   :  { %1364 = vadd.xlane.f32.xlu1 %v1363_v38 }
 0xa4d   :  { %v1360_v58 = vsel %vm51_vm0, %v1358_v57, 0.0 }
 0xa4e   :  { %1361 = vadd.xlane.f32.xlu0 %v1360_v58 }
 0xad5   :  { %v1365_v63 = vpop.xlane.xlu1 %1364 }
 0xad6   :  { %v1367_v2 = vmul.f32 0.03125, %v1365_v63 }
 0xad7   :  { %v1362_v3 = vpop.xlane.xlu0 %1361 }
 0xad8   :  { %v1369_v4 = vadd.f32 1e-05, %v1367_v2  ;;  %v1366_v5 = vmul.f32 0.03125, %v1362_v3 }
 0xada   :  { %3327 = vrsqrt.f32 %v1369_v4  ;;  %v1368_v7 = vadd.f32 1e-05, %v1366_v5 }
 0xadc   :  { %3329 = vrsqrt.f32 %v1368_v7 }
 0xae7   :  { %v3328_v10 = vpop.eup %3327 }
 0xae8   :  { %v1373_v14 = vmul.f32 %v3328_v10, %v1357_v42 }
 0xae9   :  { %v3330_v15 = vpop.eup %3329 }
 0xaea   :  { %v1372_v16 = vmul.f32 %v3330_v15, %v1356_v36  ;;  %v1379_v17 = vmul.f32 %v1377_v11, %v1373_v14 }
 0xaec   :  { %v1378_v19 = vmul.f32 %v1377_v11, %v1372_v16  ;;  %v1385_v21 = vadd.f32 %v1383_v18, %v1379_v17 }
 0xaee   :  { %v1384_v20 = vadd.f32 %v1383_v18, %v1378_v19 }
 0xaf0   :  { %3150 = vmatprep.mubr.msk.f32.mxu1 %vm51_vm0, %v1384_v20 }
 0xaf1   :  { %3151 = vmatmul.mubr.msk.f32.vlgmr.msra.gmra.mxu1 %vm51_vm0, %v1385_v21 }
 0xbb1   :  { %v3152_v23 = vpop.f32.mrf.mxu1 }
 0xbb2   :  { %v3830_v24 = vadd.f32 %v3152_v23, %v1394_v22 }
 0xbb3   :  { %v1467_v29 = vpop.f32.mrf.mxu1 }
 0xbb4   :  { %v3832_v30 = vadd.f32 %v1467_v29, %v1394_v22  ;;  %1480 = vrot.lane.b32.xlu0 %v3830_v24, %s3394_s19 }
 0xbb6   :  { %1478 = vrot.lane.b32.xlu1 %v3832_v30, %s3394_s19  ;;  %3157 = vmatprep.mubr.msk.f32.mxu1 %vm198_vm1, %v3832_v30 }
 0xbb8   :  { %1482 = vrot.lane.b32.xlu0 %v3832_v30, %s3393_s18 }
 0xbba   :  { %1484 = vrot.lane.b32.xlu1 %v3830_v24, %s3393_s18 }
 0xbbc   :  { %1492 = vrot.lane.b32.xlu0 %v3830_v24, %s3396_s21 }
 0xbbe   :  { %1488 = vrot.lane.b32.xlu1 %v3830_v24, %s3395_s20 }
 0xbc2   :  { %1486 = vrot.lane.b32.xlu1 %v3832_v30, %s3395_s20 }
 0xbc6   :  { %1490 = vrot.lane.b32.xlu1 %v3832_v30, %s3396_s21 }
 0xc26   :  { %v3852_v32 = vpop.permute.xlu0 %1480 }
 0xc27   :  { %1579 = vrot.lane.b32.xlu0 %v3852_v32, %s3396_s21 }
 0xc28   :  { %v3856_v34 = vpop.permute.xlu1 %1478 }
 0xc29   :  { %1577 = vrot.lane.b32.xlu1 %v3856_v34, %s3396_s21 }
 0xc2a   :  { %v3860_v35 = vpop.permute.xlu0 %1482 }
 0xc2c   :  { %v3862_v37 = vpop.permute.xlu1 %1484 }
 0xc2d   :  { %1666 = vrot.lane.b32.xlu0 %v3862_v37, %s3396_s21 }
 0xc2e   :  { %v1493_v40 = vpop.permute.xlu0 %1492 }
 0xc2f   :  { %3153 = vmatprep.subr.msk.mxu1 %vm198_vm1, %v1493_v40 }
 0xc30   :  { %3154 = vmatpush3.xpose.msk.msra.mxu1 %vm198_vm1, %v1493_v40  ;;  %v3868_v41 = vpop.permute.xlu1 %1488 }
 0xc31   :  { %1664 = vrot.lane.b32.xlu0 %v3860_v35, %s3396_s21  ;;  %1753 = vrot.lane.b32.xlu1 %v3868_v41, %s3396_s21 }
 0xc34   :  { %v3874_v43 = vpop.permute.xlu1 %1486 }
 0xc35   :  { %3178 = vmatprep.mubr.msk.f32.mxu0 %vm198_vm1, %v3874_v43  ;;  %1751 = vrot.lane.b32.xlu1 %v3874_v43, %s3396_s21 }
 0xc38   :  { %v1491_v47 = vpop.permute.xlu1 %1490 }
 0xc39   :  { %3155 = vmatprep.subr.msk.mxu1 %vm198_vm1, %v1491_v47 }
 0xc3a   :  { %3156 = vmatpush3.xpose.msk.msra.mxu1 %vm198_vm1, %v1491_v47 }
 0xc3d   :  { %3158 = vmatmul.mubr.msk.f32.vlgmr.msra.gmra.mxu1 %vm198_vm1, %v3830_v24 }
 0xc3e   :  { %3164 = vmatprep.mubr.msk.f32.mxu1 %vm198_vm1, %v3856_v34 }
 0xc99   :  { %v1580_v49 = vpop.permute.xlu0 %1579 }
 0xc9a   :  { %3160 = vmatprep.subr.msk.mxu1 %vm198_vm1, %v1580_v49 }
 0xc9b   :  { %v1578_v52 = vpop.permute.xlu1 %1577  ;;  %3161 = vmatpush3.xpose.msk.msra.mxu1 %vm198_vm1, %v1580_v49 }
 0xc9c   :  { %3162 = vmatprep.subr.msk.mxu1 %vm198_vm1, %v1578_v52 }
 0xc9f   :  { %v1667_v1 = vpop.permute.xlu0 %1666  ;;  %3163 = vmatpush3.xpose.msk.msra.mxu1 %vm198_vm1, %v1578_v52 }
 0xca0   :  { %3167 = vmatprep.subr.msk.mxu1 %vm198_vm1, %v1667_v1 }
 0xca2   :  { %3165 = vmatmul.mubr.msk.f32.vlgmr.msra.gmra.mxu1 %vm198_vm1, %v3852_v32 }
 0xca3   :  { %v1665_v0 = vpop.permute.xlu0 %1664  ;;  %v1754_v54 = vpop.permute.xlu1 %1753  ;;  %3168 = vmatpush3.xpose.msk.msra.mxu1 %vm198_vm1, %v1667_v1  ;;  %3171 = vmatprep.mubr.msk.f32.mxu1 %vm198_vm1, %v3860_v35 }
 0xca4   :  { %3169 = vmatprep.subr.msk.mxu1 %vm198_vm1, %v1665_v0  ;;  %3174 = vmatprep.subr.msk.mxu0 %vm198_vm1, %v1754_v54 }
 0xca5   :  { %3175 = vmatpush3.xpose.msk.msra.mxu0 %vm198_vm1, %v1754_v54 }
 0xca7   :  { %v1752_v44 = vpop.permute.xlu1 %1751  ;;  %3170 = vmatpush3.xpose.msk.msra.mxu1 %vm198_vm1, %v1665_v0 }
 0xca8   :  { %3176 = vmatprep.subr.msk.mxu0 %vm198_vm1, %v1752_v44 }
 0xca9   :  { %3177 = vmatpush3.xpose.msk.msra.mxu0 %vm198_vm1, %v1752_v44 }
 0xcaa   :  { %3172 = vmatmul.mubr.msk.f32.vlgmr.msra.gmra.mxu1 %vm198_vm1, %v3862_v37 }
 0xcac   :  { %3179 = vmatmul.mubr.msk.f32.vlgmr.msra.gmra.mxu0 %vm198_vm1, %v3868_v41 }
 0xcfd   :  { %v3159_v56 = vpop.f32.mrf.mxu1 }
 0xcfe   :  { %v1839_v46 = vmul.f32 0.35355338, %v3159_v56 }
 0xcff   :  { %v1568_v27 = vpop.f32.mrf.mxu1 }
 0xd00   :  { %v1838_v48 = vmul.f32 0.35355338, %v1568_v27  ;;  %v1847_v42 = vsel %vm3583_vm6, %v1839_v46, -1e+30 }
 0xd01   :  { %v1857_v50 = vsel %vm563_vm7, %v1847_v42, -inf }
 0xd02   :  { %1858 = vmax.xlane.f32.xlu1 %v1857_v50  ;;  %v1846_v36 = vsel %vm3587_vm8, %v1838_v48, -1e+30 }
 0xd03   :  { %v1854_v45 = vsel %vm563_vm7, %v1846_v36, -inf }
 0xd04   :  { %1855 = vmax.xlane.f32.xlu0 %v1854_v45 }
 0xd62   :  { %v3166_v38 = vpop.f32.mrf.mxu1 }
 0xd63   :  { %v1841_v57 = vmul.f32 0.35355338, %v3166_v38 }
 0xd64   :  { %v1655_v58 = vpop.f32.mrf.mxu1 }
 0xd65   :  { %v1840_v59 = vmul.f32 0.35355338, %v1655_v58  ;;  %v1849_v60 = vsel %vm3583_vm6, %v1841_v57, -1e+30 }
 0xd66   :  { %v1863_v61 = vsel %vm563_vm7, %v1849_v60, -inf }
 0xd67   :  { %1864 = vmax.xlane.f32.xlu0 %v1863_v61  ;;  %v1848_v62 = vsel %vm3587_vm8, %v1840_v59, -1e+30 }
 0xd68   :  { %v1860_v2 = vsel %vm563_vm7, %v1848_v62, -inf }
 0xd6a   :  { %v3173_v63 = vpop.f32.mrf.mxu1 }
 0xd6b   :  { %v1843_v3 = vmul.f32 0.35355338, %v3173_v63  ;;  %1861 = vmax.xlane.f32.xlu0 %v1860_v2 }
 0xd6c   :  { %v1742_v4 = vpop.f32.mrf.mxu1  ;;  %v3180_v5 = vpop.f32.mrf.mxu0 }
 0xd6d   :  { %v1842_v7 = vmul.f32 0.35355338, %v1742_v4  ;;  %v1845_v10 = vmul.f32 0.35355338, %v3180_v5  ;;  %v1851_v11 = vsel %vm3583_vm6, %v1843_v3, -1e+30 }
 0xd6e   :  { %v1829_v14 = vpop.f32.mrf.mxu0  ;;  %v1869_v15 = vsel %vm563_vm7, %v1851_v11, -inf }
 0xd6f   :  { %v1844_v16 = vmul.f32 0.35355338, %v1829_v14  ;;  %1870 = vmax.xlane.f32.xlu1 %v1869_v15  ;;  %v1850_v17 = vsel %vm3587_vm8, %v1842_v7, -1e+30  ;;  %v1853_v18 = vsel %vm3583_vm6, %v1845_v10, -1e+30 }
 0xd70   :  { %v1866_v19 = vsel %vm563_vm7, %v1850_v17, -inf  ;;  %v1875_v21 = vsel %vm563_vm7, %v1853_v18, -inf }
 0xd71   :  { %1867 = vmax.xlane.f32.xlu0 %v1866_v19  ;;  %v1852_v20 = vsel %vm3587_vm8, %v1844_v16, -1e+30 }
 0xd72   :  { %v1872_v22 = vsel %vm563_vm7, %v1852_v20, -inf }
 0xd73   :  { %1876 = vmax.xlane.f32.xlu1 %v1875_v21 }
 0xd75   :  { %1873 = vmax.xlane.f32.xlu0 %v1872_v22 }
 0xd84   :  { %1942 = vrot.lane.b32.xlu1 %v3832_v30, %s3397_s22 }
 0xd88   :  { %2031 = vrot.lane.b32.xlu1 %v3852_v32, %s3397_s22 }
 0xd8b   :  { %1944 = vrot.lane.b32.xlu0 %v3830_v24, %s3397_s22  ;;  %v1859_v23 = vpop.xlane.xlu1 %1858 }
 0xd8c   :  { %2029 = vrot.lane.b32.xlu1 %v3856_v34, %s3397_s22  ;;  %v1879_v30 = vsub.f32 %v1847_v42, %v1859_v23 }
 0xd8d   :  { %v1856_v6 = vpop.xlane.xlu0 %1855 }
 0xd8e   :  { %v1878_v9 = vsub.f32 %v1846_v36, %v1856_v6  ;;  %v1888_v40 = vmul.f32 1.442695, %v1879_v30 }
 0xd8f   :  { %2118 = vrot.lane.b32.xlu0 %v3862_v37, %s3397_s22 }
 0xd90   :  { %2205 = vrot.lane.b32.xlu1 %v3868_v41, %s3397_s22  ;;  %v1886_v29 = vmul.f32 1.442695, %v1878_v9 }
 0xd92   :  { %3331 = vpow2.f32 %v1886_v29 }
 0xd93   :  { %3333 = vpow2.f32 %v1888_v40 }
 0xd9f   :  { %v3942_v32 = vpop.eup %3331 }
 0xda0   :  { %v1902_v24 = vsel %vm563_vm7, %v3942_v32, 0.0  ;;  %v3946_v34 = vpop.eup %3333 }
 0xda1   :  { %v1905_v37 = vsel %vm563_vm7, %v3946_v34, 0.0 }
 0xdae   :  { %1903 = vadd.xlane.f32.xlu0 %v1902_v24 }
 0xdb4   :  { %1906 = vadd.xlane.f32.xlu1 %v1905_v37 }
 0xdf0   :  { %v1865_v41 = vpop.xlane.xlu0 %1864 }
 0xdf1   :  { %v1881_v47 = vsub.f32 %v1849_v60, %v1865_v41 }
 0xdf3   :  { %v1892_v49 = vmul.f32 1.442695, %v1881_v47 }
 0xdf4   :  { %v1862_v52 = vpop.xlane.xlu0 %1861 }
 0xdf5   :  { %3335 = vpow2.f32 %v1892_v49  ;;  %v1880_v1 = vsub.f32 %v1848_v62, %v1862_v52 }
 0xdf7   :  { %v1890_v0 = vmul.f32 1.442695, %v1880_v1 }
 0xdf8   :  { %v1871_v54 = vpop.xlane.xlu1 %1870 }
 0xdf9   :  { %3337 = vpow2.f32 %v1890_v0  ;;  %v1883_v44 = vsub.f32 %v1851_v11, %v1871_v54 }
 0xdfa   :  { %v1868_v56 = vpop.xlane.xlu0 %1867 }
 0xdfb   :  { %v1882_v27 = vsub.f32 %v1850_v17, %v1868_v56  ;;  %v1896_v42 = vmul.f32 1.442695, %v1883_v44 }
 0xdfc   :  { %v1877_v46 = vpop.xlane.xlu1 %1876 }
 0xdfd   :  { %v1885_v48 = vsub.f32 %v1853_v18, %v1877_v46  ;;  %v1894_v57 = vmul.f32 1.442695, %v1882_v27 }
 0xdfe   :  { %v1874_v50 = vpop.xlane.xlu0 %1873 }
 0xdff   :  { %v1900_v36 = vmul.f32 1.442695, %v1885_v48  ;;  %v1884_v45 = vsub.f32 %v1852_v20, %v1874_v50 }
 0xe00   :  { %v1943_v38 = vpop.permute.xlu1 %1942 }
 0xe01   :  { %3339 = vpow2.f32 %v1900_v36  ;;  %v1898_v58 = vmul.f32 1.442695, %v1884_v45  ;;  %v2849_v36 = vld [vmem:[%s4138_s3 + $0x38] sm:$0xff]  ;;  %v2848_v45 = vld [vmem:[%s4138_s3 + $0x30] sm:$0xff] }
 0xe02   :  { %v3950_v59 = vpop.eup %3335  ;;  %3341 = vpow2.f32 %v1896_v42  ;;  %v1945_v60 = vpop.permute.xlu0 %1944 }
 0xe03   :  { %3343 = vpow2.f32 %v1898_v58  ;;  %3181 = vmatprep.subr.mxu1 %v1945_v60  ;;  %v1911_v61 = vsel %vm563_vm7, %v3950_v59, 0.0 }
 0xe04   :  { %1912 = vadd.xlane.f32.xlu1 %v1911_v61  ;;  %3182 = vmatpush3.msra.mxu1 %v1945_v60  ;;  %3345 = vpow2.f32 %v1894_v57  ;;  %v2032_v63 = vpop.permute.xlu1 %2031  ;;  %v2846_v57 = vld [vmem:[%s4138_s3 + $0x20] sm:$0xff] }
 0xe05   :  { %3183 = vmatprep.subr.mxu1 %v1943_v38 }
 0xe06   :  { %v3338_v62 = vpop.eup %3337  ;;  %3184 = vmatpush3.msra.mxu1 %v1943_v38  ;;  %v2119_v2 = vpop.permute.xlu0 %2118  ;;  %v2847_v38 = vld [vmem:[%s4138_s3 + $0x28] sm:$0xff] }
 0xe07   :  { %3188 = vmatprep.subr.mxu1 %v2032_v63  ;;  %3195 = vmatprep.subr.mxu0 %v2119_v2  ;;  %v1908_v3 = vsel %vm563_vm7, %v3338_v62, 0.0 }
 0xe08   :  { %1909 = vadd.xlane.f32.xlu0 %v1908_v3  ;;  %3196 = vmatpush3.msra.mxu0 %v2119_v2  ;;  %v2030_v17 = vpop.permute.xlu1 %2029 }
 0xe0c   :  { %v2206_v19 = vpop.permute.xlu1 %2205 }
 0xe0e   :  { %v3340_v4 = vpop.eup %3339 }
 0xe0f   :  { %v3955_v5 = vpop.eup %3341  ;;  %v1923_v7 = vsel %vm563_vm7, %v3340_v4, 0.0 }
 0xe10   :  { %v3344_v10 = vpop.eup %3343  ;;  %1924 = vadd.xlane.f32.xlu1 %v1923_v7  ;;  %v1917_v15 = vsel %vm563_vm7, %v3955_v5, 0.0 }
 0xe11   :  { %v1920_v11 = vsel %vm563_vm7, %v3344_v10, 0.0  ;;  %v3346_v14 = vpop.eup %3345 }
 0xe12   :  { %1921 = vadd.xlane.f32.xlu0 %v1920_v11  ;;  %v1914_v16 = vsel %vm563_vm7, %v3346_v14, 0.0 }
 0xe14   :  { %1918 = vadd.xlane.f32.xlu1 %v1917_v15 }
 0xe16   :  { %1915 = vadd.xlane.f32.xlu0 %v1914_v16 }
 0xe25   :  { %2203 = vrot.lane.b32.xlu1 %v3874_v43, %s3397_s22 }
 0xe2c   :  { %2116 = vrot.lane.b32.xlu0 %v3860_v35, %s3397_s22 }
 0xe37   :  { %v1904_v18 = vpop.xlane.xlu0 %1903 }
 0xe38   :  { %3347 = vrcp.f32 %v1904_v18 }
 0xe3d   :  { %v1907_v20 = vpop.xlane.xlu1 %1906 }
 0xe3e   :  { %3349 = vrcp.f32 %v1907_v20 }
 0xe45   :  { %v3348_v21 = vpop.eup %3347 }
 0xe46   :  { %v1934_v22 = vmul.f32 %v3348_v21, %v3942_v32 }
 0xe48   :  { %3185 = vmatprep.mubr.msk.f32.mxu1 %vm563_vm7, %v1934_v22 }
 0xe4b   :  { %v3350_v6 = vpop.eup %3349 }
 0xe4c   :  { %v1935_v9 = vmul.f32 %v3350_v6, %v3946_v34 }
 0xe4e   :  { %3186 = vmatmul.mubr.msk.f32.vlgmr.msra.gmra.mxu1 %vm563_vm7, %v1935_v9 }
 0xe4f   :  { %3189 = vmatpush3.msra.mxu1 %v2032_v63 }
 0xe50   :  { %3190 = vmatprep.subr.mxu1 %v2030_v17 }
 0xe51   :  { %3191 = vmatpush3.msra.mxu1 %v2030_v17  ;;  %v2328_v17 = vrot.slane %v3820_v8, %v1037_v31 }
 0xe52   :  { %3202 = vmatprep.subr.mxu1 %v2206_v19 }
 0xe8d   :  { %v1913_v35 = vpop.xlane.xlu1 %1912 }
 0xe8e   :  { %3351 = vrcp.f32 %v1913_v35 }
 0xe91   :  { %v1910_v43 = vpop.xlane.xlu0 %1909 }
 0xe92   :  { %3353 = vrcp.f32 %v1910_v43 }
 0xe99   :  { %v1925_v23 = vpop.xlane.xlu1 %1924 }
 0xe9a   :  { %3355 = vrcp.f32 %v1925_v23 }
 0xe9b   :  { %v1922_v29 = vpop.xlane.xlu0 %1921  ;;  %v3352_v40 = vpop.eup %3351 }
 0xe9c   :  { %3357 = vrcp.f32 %v1922_v29  ;;  %v1937_v37 = vmul.f32 %v3352_v40, %v3950_v59 }
 0xe9d   :  { %v1919_v30 = vpop.xlane.xlu1 %1918 }
 0xe9e   :  { %3359 = vrcp.f32 %v1919_v30 }
 0xe9f   :  { %v3354_v32 = vpop.eup %3353  ;;  %v1916_v24 = vpop.xlane.xlu0 %1915 }
 0xea0   :  { %3361 = vrcp.f32 %v1916_v24  ;;  %v1936_v34 = vmul.f32 %v3354_v32, %v3338_v62 }
 0xea1   :  { %v2204_v47 = vpop.permute.xlu1 %2203 }
 0xea2   :  { %3192 = vmatprep.mubr.msk.f32.mxu1 %vm563_vm7, %v1936_v34  ;;  %v2855_v34 = vld [vmem:[%s4139_s4 + $0x38] sm:$0xff] }
 0xea3   :  { %3193 = vmatmul.mubr.msk.f32.vlgmr.msra.gmra.mxu1 %vm563_vm7, %v1937_v37  ;;  %v2117_v41 = vpop.permute.xlu0 %2116  ;;  %v2854_v37 = vld [vmem:[%s4139_s4 + $0x30] sm:$0xff] }
 0xea4   :  { %3203 = vmatpush3.msra.mxu1 %v2206_v19  ;;  %3197 = vmatprep.subr.mxu0 %v2117_v41 }
 0xea5   :  { %3204 = vmatprep.subr.mxu1 %v2204_v47  ;;  %3198 = vmatpush3.msra.mxu0 %v2117_v41  ;;  %v2853_v41 = vld [vmem:[%s4139_s4 + $0x28] sm:$0xff] }
 0xea6   :  { %3205 = vmatpush3.msra.mxu1 %v2204_v47  ;;  %3209 = vmatprep.subr.mxu0 %v2849_v36  ;;  %v2852_v47 = vld [vmem:[%s4139_s4 + $0x20] sm:$0xff] }
 0xea7   :  { %v3356_v49 = vpop.eup %3355  ;;  %3220 = vmatprep.subr.mxu1 %v2855_v34 }
 0xea8   :  { %v1941_v0 = vmul.f32 %v3356_v49, %v3340_v4  ;;  %v2873_v49 = vld [vmem:[%s4140_s5 + $0xf8] sm:$0xff] }
 0xea9   :  { %v3358_v52 = vpop.eup %3357 }
 0xeaa   :  { %v1940_v1 = vmul.f32 %v3358_v52, %v3344_v10  ;;  %v2872_v52 = vld [vmem:[%s4140_s5 + $0xf0] sm:$0xff] }
 0xeab   :  { %v3360_v54 = vpop.eup %3359 }
 0xeac   :  { %3206 = vmatprep.mubr.msk.f32.mxu1 %vm563_vm7, %v1940_v1  ;;  %v1939_v46 = vmul.f32 %v3360_v54, %v3955_v5  ;;  %v2871_v1 = vld [vmem:[%s4140_s5 + $0xe8] sm:$0xff]  ;;  %v2869_v54 = vld [vmem:[%s4140_s5 + $0xd8] sm:$0xff] }
 0xead   :  { %v3362_v44 = vpop.eup %3361  ;;  %3207 = vmatmul.mubr.msk.f32.vlgmr.msra.gmra.mxu1 %vm563_vm7, %v1941_v0  ;;  %v2870_v0 = vld [vmem:[%s4140_s5 + $0xe0] sm:$0xff] }
 0xeae   :  { %v1938_v56 = vmul.f32 %v3362_v44, %v3346_v14  ;;  %3221 = vmatpush3.msra.mxu1 %v2855_v34  ;;  %v2868_v44 = vld [vmem:[%s4140_s5 + $0xd0] sm:$0xff] }
 0xeaf   :  { %3222 = vmatprep.subr.mxu1 %v2854_v37 }
 0xeb0   :  { %3199 = vmatprep.mubr.msk.f32.mxu0 %vm563_vm7, %v1938_v56  ;;  %3223 = vmatpush3.msra.mxu1 %v2854_v37  ;;  %v2867_v56 = vld [vmem:[%s4140_s5 + $0xc8] sm:$0xff] }
 0xeb1   :  { %3200 = vmatmul.mubr.msk.f32.vlgmr.msra.gmra.mxu0 %vm563_vm7, %v1939_v46  ;;  %3224 = vmatprep.subr.mxu1 %v2853_v41  ;;  %v2866_v46 = vld [vmem:[%s4140_s5 + $0xc0] sm:$0xff] }
 0xeb2   :  { %3210 = vmatpush3.msra.mxu0 %v2849_v36  ;;  %3225 = vmatpush3.msra.mxu1 %v2853_v41  ;;  %v2681_v41 = vld [vmem:[%s4142_s7 + $0x10] sm:$0xff] }
 0xeb3   :  { %3211 = vmatprep.subr.mxu0 %v2848_v45  ;;  %3226 = vmatprep.subr.mxu1 %v2852_v47 }
 0xeb4   :  { %3212 = vmatpush3.msra.mxu0 %v2848_v45  ;;  %3227 = vmatpush3.msra.mxu1 %v2852_v47  ;;  %v2680_v47 = vld [vmem:[%s4142_s7 + $0x8] sm:$0xff] }
 0xeb5   :  { %3213 = vmatprep.subr.mxu0 %v2847_v38 }
 0xeb6   :  { %3214 = vmatpush3.msra.mxu0 %v2847_v38 }
 0xeb7   :  { %3215 = vmatprep.subr.mxu0 %v2846_v57 }
 0xeb8   :  { %3216 = vmatpush3.msra.mxu0 %v2846_v57 }
 0xeb9   :  { %3231 = vmatprep.subr.mxu0 %v2873_v49 }
 0xf0e   :  { %v3187_v27 = vpop.f32.mrf.mxu1 }
 0xf10   :  { %v2020_v48 = vpop.f32.mrf.mxu1 }
 0xf63   :  { %v3194_v42 = vpop.f32.mrf.mxu1 }
 0xf64   :  { %2294 = vrot.lane.b32.xlu1 %v3194_v42, %s3398_s0  ;;  %v2863_v42 = vld [vmem:[%s4140_s5 + $0xa8] sm:$0xff] }
 0xf65   :  { %v2107_v50 = vpop.f32.mrf.mxu1 }
 0xf66   :  { %2292 = vrot.lane.b32.xlu0 %v2107_v50, %s3398_s0  ;;  %v2862_v50 = vld [vmem:[%s4140_s5 + $0xa0] sm:$0xff] }
 0xf6d   :  { %v3208_v59 = vpop.f32.mrf.mxu1 }
 0xf6f   :  { %v2281_v61 = vpop.f32.mrf.mxu1 }
 0xf71   :  { %v3201_v58 = vpop.f32.mrf.mxu0 }
 0xf72   :  { %2302 = vrot.lane.b32.xlu1 %v3201_v58, %s3399_s9 }
 0xf73   :  { %v2194_v60 = vpop.f32.mrf.mxu0 }
 0xf74   :  { %2300 = vrot.lane.b32.xlu0 %v2194_v60, %s3399_s9  ;;  %v2441_v60 = vrot.slane %v3820_v8, %v1150_v12  ;;  %v2861_v12 = vld [vmem:[%s4140_s5 + $0x98] sm:$0xff] }
 0xf76   :  { %2310 = vrot.lane.b32.xlu1 %v3208_v59, %s3400_s10 }
 0xf78   :  { %2308 = vrot.lane.b32.xlu0 %v2281_v61, %s3400_s10 }
 0xfd6   :  { %v2295_v62 = vpop.permute.xlu1 %2294 }
 0xfd7   :  { %v2315_v7 = vsel %vm198_vm1, %v3187_v27, %v2295_v62  ;;  %v2865_v27 = vld [vmem:[%s4140_s5 + $0xb8] sm:$0xff] }
 0xfd8   :  { %v2293_v63 = vpop.permute.xlu0 %2292 }
 0xfd9   :  { %v2314_v4 = vsel %vm198_vm1, %v2020_v48, %v2293_v63  ;;  %v2864_v48 = vld [vmem:[%s4140_s5 + $0xb0] sm:$0xff]  ;;  %v2447_v63 = vrot.slane %v3820_v8, %v1156_v13 }
 0xfda   :  { %v2860_v13 = vld [vmem:[%s4140_s5 + $0x90] sm:$0xff] }
 0xfe4   :  { %v2303_v2 = vpop.permute.xlu1 %2302 }
 0xfe5   :  { %v2317_v14 = vsel %vm563_vm7, %v2315_v7, %v2303_v2 }
 0xfe6   :  { %v2301_v3 = vpop.permute.xlu0 %2300 }
 0xfe7   :  { %v2316_v10 = vsel %vm563_vm7, %v2314_v4, %v2301_v3 }
 0xfe8   :  { %v2311_v5 = vpop.permute.xlu1 %2310 }
 0xfe9   :  { %v2319_v16 = vsel %vm1028_vm9, %v2317_v14, %v2311_v5  ;;  %v2858_v14 = vld [vmem:[%s4140_s5 + $0x80] sm:$0xff] }
 0xfea   :  { %v2309_v11 = vpop.permute.xlu0 %2308 }
 0xfeb   :  { %v2318_v15 = vsel %vm1028_vm9, %v2316_v10, %v2309_v11  ;;  %v2859_v11 = vld [vmem:[%s4140_s5 + $0x88] sm:$0xff] }
 0xfec   :  { %3217 = vmatprep.mubr.msk.f32.mxu0 %vm51_vm0, %v2318_v15  ;;  %v2458_v15 = vrot.slane %v3820_v8, %v1166_v33 }
 0xfed   :  { %3218 = vmatmul.mubr.msk.f32.vlgmr.msra.gmra.mxu0 %vm51_vm0, %v2319_v16 }
 0xfee   :  { %3232 = vmatpush3.msra.mxu0 %v2873_v49  ;;  %v2679_v49 = vld [vmem:[%s4142_s7] sm:$0xff] }
 0xfef   :  { %3233 = vmatprep.subr.mxu0 %v2872_v52 }
 0xff0   :  { %3234 = vmatpush3.msra.mxu0 %v2872_v52 }
 0xff1   :  { %3235 = vmatprep.subr.mxu0 %v2871_v1 }
 0xff2   :  { %3236 = vmatpush3.msra.mxu0 %v2871_v1 }
 0xff3   :  { %3237 = vmatprep.subr.mxu0 %v2870_v0 }
 0xff4   :  { %3238 = vmatpush3.msra.mxu0 %v2870_v0 }
 0xff5   :  { %3239 = vmatprep.subr.mxu0 %v2869_v54 }
 0xff6   :  { %3240 = vmatpush3.msra.mxu0 %v2869_v54 }
 0xff7   :  { %3241 = vmatprep.subr.mxu0 %v2868_v44 }
 0xff8   :  { %3242 = vmatpush3.msra.mxu0 %v2868_v44 }
 0xff9   :  { %3243 = vmatprep.subr.mxu0 %v2867_v56 }
 0xffa   :  { %3244 = vmatpush3.msra.mxu0 %v2867_v56 }
 0xffb   :  { %3245 = vmatprep.subr.mxu0 %v2866_v46 }
 0xffc   :  { %3246 = vmatpush3.msra.mxu0 %v2866_v46  ;;  %v2640_v46 = vld [vmem:[%s4141_s6] sm:$0xff]  ;;  %s3401_s6 = smov [#allocation2]  }
 0xffd   :  { %3247 = vmatprep.subr.mxu0 %v2865_v27 }
 0xffe   :  { %3248 = vmatpush3.msra.mxu0 %v2865_v27 }
 0xfff   :  { %3249 = vmatprep.subr.mxu0 %v2864_v48 }
0x1000   :  { %3250 = vmatpush3.msra.mxu0 %v2864_v48  ;;  %v2670_v48 = vrot.slane %v2640_v46, %v3482_v26 }
0x1001   :  { %3251 = vmatprep.subr.mxu0 %v2863_v42 }
0x1002   :  { %3252 = vmatpush3.msra.mxu0 %v2863_v42 }
0x1003   :  { %3253 = vmatprep.subr.mxu0 %v2862_v50 }
0x1004   :  { %3254 = vmatpush3.msra.mxu0 %v2862_v50 }
0x1005   :  { %3255 = vmatprep.subr.mxu0 %v2861_v12 }
0x1006   :  { %3256 = vmatpush3.msra.mxu0 %v2861_v12 }
0x1007   :  { %3257 = vmatprep.subr.mxu0 %v2860_v13 }
0x1008   :  { %3258 = vmatpush3.msra.mxu0 %v2860_v13 }
0x1009   :  { %3259 = vmatprep.subr.mxu0 %v2859_v11 }
0x100a   :  { %3260 = vmatpush3.msra.mxu0 %v2859_v11 }
0x100b   :  { %3261 = vmatprep.subr.mxu0 %v2858_v14 }
0x100c   :  { %3262 = vmatpush3.msra.mxu0 %v2858_v14 }
0x10ad   :  { %v3219_v18 = vpop.f32.mrf.mxu0 }
0x10ae   :  { %v2407_v19 = vadd.f32 %v3219_v18, %v2328_v17 }
0x10af   :  { %v2401_v20 = vpop.f32.mrf.mxu0 }
0x10b0   :  { %v4008_v21 = vadd.f32 %v2407_v19, %v3792_v53  ;;  %v2402_v22 = vadd.f32 %v2401_v20, %v2328_v17 }
0x10b2   :  { %v4011_v6 = vadd.f32 %v2402_v22, %v3795_v55  ;;  %v2415_v9 = vsel %vm51_vm0, %v4008_v21, 0.0 }
0x10b3   :  { %2416 = vadd.xlane.f32.xlu1 %v2415_v9  ;;  %v2562_v9 = vrot.slane %v3820_v8, %v1269_v51 }
0x10b4   :  { %v2412_v35 = vsel %vm51_vm0, %v4011_v6, 0.0 }
0x10b5   :  { %2413 = vadd.xlane.f32.xlu0 %v2412_v35 }
0x113c   :  { %v2417_v43 = vpop.xlane.xlu1 %2416 }
0x113d   :  { %v2419_v31 = vmul.f32 0.03125, %v2417_v43 }
0x113e   :  { %v2414_v23 = vpop.xlane.xlu0 %2413 }
0x113f   :  { %v2418_v29 = vmul.f32 0.03125, %v2414_v23  ;;  %v4018_v30 = vsub.f32 %v4008_v21, %v2419_v31 }
0x1141   :  { %v4021_v53 = vsub.f32 %v4011_v6, %v2418_v29  ;;  %v2423_v32 = vmul.f32 %v4018_v30, %v4018_v30 }
0x1143   :  { %v2422_v55 = vmul.f32 %v4021_v53, %v4021_v53  ;;  %v2427_v24 = vsel %vm51_vm0, %v2423_v32, 0.0 }
0x1145   :  { %v2424_v40 = vsel %vm51_vm0, %v2422_v55, 0.0 }
0x1146   :  { %2425 = vadd.xlane.f32.xlu0 %v2424_v40 }
0x114a   :  { %2428 = vadd.xlane.f32.xlu0 %v2427_v24 }
0x11cf   :  { %v2426_v36 = vpop.xlane.xlu0 %2425 }
0x11d0   :  { %v2430_v45 = vmul.f32 0.03125, %v2426_v36 }
0x11d2   :  { %v2432_v38 = vadd.f32 1e-05, %v2430_v45 }
0x11d3   :  { %v2429_v57 = vpop.xlane.xlu0 %2428 }
0x11d4   :  { %3363 = vrsqrt.f32 %v2432_v38  ;;  %v2431_v58 = vmul.f32 0.03125, %v2429_v57  ;;  %v2676_v38 = vrot.slane %v2640_v46, %v3490_v28 }
0x11d6   :  { %v2433_v59 = vadd.f32 1e-05, %v2431_v58 }
0x11d8   :  { %3365 = vrsqrt.f32 %v2433_v59 }
0x11e1   :  { %v3364_v61 = vpop.eup %3363 }
0x11e2   :  { %v2436_v62 = vmul.f32 %v3364_v61, %v4021_v53 }
0x11e4   :  { %v2442_v2 = vmul.f32 %v2441_v60, %v2436_v62 }
0x11e5   :  { %v3366_v3 = vpop.eup %3365 }
0x11e6   :  { %v2437_v4 = vmul.f32 %v3366_v3, %v4018_v30  ;;  %v2448_v5 = vadd.f32 %v2447_v63, %v2442_v2 }
0x11e8   :  { %v2443_v7 = vmul.f32 %v2441_v60, %v2437_v4  ;;  %3228 = vmatprep.mubr.msk.f32.mxu1 %vm51_vm0, %v2448_v5  ;;  %v2686_v60 = vrot.slane %v2640_v46, %v3499_v39 }
0x11ea   :  { %v2449_v10 = vadd.f32 %v2447_v63, %v2443_v7 }
0x11ec   :  { %3229 = vmatmul.mubr.msk.f32.vlgmr.msra.gmra.mxu1 %vm51_vm0, %v2449_v10 }
0x12ac   :  { %v3230_v16 = vpop.f32.mrf.mxu1 }
0x12ad   :  { %v2537_v17 = vadd.f32 %v3230_v16, %v2458_v15 }
0x12ae   :  { %v2531_v18 = vpop.f32.mrf.mxu1 }
0x12af   :  { %v2532_v19 = vadd.f32 %v2531_v18, %v2458_v15  ;;  %v2541_v22 = vmax.f32 %v2537_v17, 0.0 }
0x12b1   :  { %v2540_v20 = vmax.f32 %v2532_v19, 0.0 }
0x12b3   :  { %3263 = vmatprep.mubr.f32.mxu0 %v2540_v20 }
0x12b4   :  { %3264 = vmatmul.mubr.f32.vlgmr.msra.gmra.mxu0 %v2541_v22 }
0x1374   :  { %v3265_v35 = vpop.f32.mrf.mxu0 }
0x1375   :  { %v2635_v43 = vadd.f32 %v3265_v35, %v2562_v9 }
0x1376   :  { %v2629_v31 = vpop.f32.mrf.mxu0 }
0x1377   :  { %v2639_v23 = vadd.f32 %v2635_v43, %v4008_v21  ;;  %v2630_v29 = vadd.f32 %v2629_v31, %v2562_v9 }
0x1379   :  { %v2638_v33 = vadd.f32 %v2630_v29, %v4011_v6  ;;  %v2644_v30 = vsel %vm51_vm0, %v2639_v23, 0.0  ;;  %v2682_v6 = vld [vmem:[%s4142_s7 + $0x18] sm:$0xff]  ;;  %s2775_s7 = sshll.u32 %s3401_s6, 4  ;;  %s2776_s7 = int_to_ptr.vmem [resolvable:$true] %s2775_s7 }
0x137a   :  { %2645 = vadd.xlane.f32.xlu1 %v2644_v30  ;;  %3266 = vmatprep.subr.mxu1 %v2682_v6  ;;  %s3371_s21 = scalar_lea.vmem %s2776_s7, 256  ;;  %p3376_p1 = scmp.lt.s32.totalorder %s2776_s7, %s2776_s7 }
0x137b   :  { %v2641_v53 = vsel %vm51_vm0, %v2638_v33, 0.0  ;;  %3267 = vmatpush3.msra.mxu1 %v2682_v6  ;;  %p3372_p0 = scmp.ne.s32.totalorder %s2776_s7, %s3371_s21  ;;  %p3377_p2 = scmp.lt.s32.totalorder %s3371_s21, %s3371_s21 }
0x137c   :  { %2642 = vadd.xlane.f32.xlu0 %v2641_v53  ;;  %3268 = vmatprep.subr.mxu1 %v2681_v41 }
0x137d   :  { %3269 = vmatpush3.msra.mxu1 %v2681_v41  ;;  %p3378_p3 = por %p3377_p2, %p3376_p1 }
0x137e   :  { %3270 = vmatprep.subr.mxu1 %v2680_v47 }
0x137f   :  { %3271 = vmatpush3.msra.mxu1 %v2680_v47  ;;  %p3379_p4 = pnand %p3378_p3, %p3372_p0 }
0x1380   :  { %3272 = vmatprep.subr.mxu1 %v2679_v49 }
0x1381   :  { %3273 = vmatpush3.msra.mxu1 %v2679_v49 }
0x1403   :  { %v2646_v55 = vpop.xlane.xlu1 %2645 }
0x1404   :  { %v2648_v40 = vmul.f32 0.03125, %v2646_v55 }
0x1405   :  { %v2643_v32 = vpop.xlane.xlu0 %2642 }
0x1406   :  { %v2650_v25 = vsub.f32 %v2639_v23, %v2648_v40  ;;  %v2647_v24 = vmul.f32 0.03125, %v2643_v32 }
0x1408   :  { %v2649_v51 = vsub.f32 %v2638_v33, %v2647_v24  ;;  %v2652_v8 = vmul.f32 %v2650_v25, %v2650_v25 }
0x140a   :  { %v2656_v34 = vsel %vm51_vm0, %v2652_v8, 0.0  ;;  %v2651_v37 = vmul.f32 %v2649_v51, %v2649_v51 }
0x140b   :  { %2657 = vadd.xlane.f32.xlu1 %v2656_v34 }
0x140c   :  { %v2653_v21 = vsel %vm51_vm0, %v2651_v37, 0.0 }
0x140d   :  { %2654 = vadd.xlane.f32.xlu0 %v2653_v21 }
0x1494   :  { %v2658_v52 = vpop.xlane.xlu1 %2657 }
0x1495   :  { %v2660_v1 = vmul.f32 0.03125, %v2658_v52 }
0x1496   :  { %v2655_v0 = vpop.xlane.xlu0 %2654 }
0x1497   :  { %v2662_v54 = vadd.f32 1e-05, %v2660_v1  ;;  %v2659_v44 = vmul.f32 0.03125, %v2655_v0 }
0x1499   :  { %3367 = vrsqrt.f32 %v2662_v54  ;;  %v2661_v56 = vadd.f32 1e-05, %v2659_v44 }
0x149b   :  { %3369 = vrsqrt.f32 %v2661_v56 }
0x14a6   :  { %v3368_v27 = vpop.eup %3367 }
0x14a7   :  { %v2666_v42 = vmul.f32 %v3368_v27, %v2650_v25 }
0x14a8   :  { %v3370_v50 = vpop.eup %3369 }
0x14a9   :  { %v2665_v36 = vmul.f32 %v3370_v50, %v2649_v51  ;;  %v2672_v45 = vmul.f32 %v2670_v48, %v2666_v42 }
0x14ab   :  { %v2671_v57 = vmul.f32 %v2670_v48, %v2665_v36  ;;  %v2678_v59 = vadd.f32 %v2676_v38, %v2672_v45 }
0x14ad   :  { %v2677_v58 = vadd.f32 %v2676_v38, %v2671_v57 }
0x14af   :  { %3274 = vmatprep.mubr.msk.f32.mxu1 %vm51_vm0, %v2677_v58 }
0x14b0   :  { %3275 = vmatmul.mubr.msk.f32.vlgmr.msra.gmra.mxu1 %vm51_vm0, %v2678_v59 }
0x1570   :  { %v3276_v61 = vpop.f32.mrf.mxu1 }
0x1571   :  { %v2765_v62 = vadd.f32 %v3276_v61, %v2686_v60 }
0x1572   :  { %v2759_v26 = vpop.f32.mrf.mxu1 }
0x1573   :  { %2769 = vst [vmem:[#allocation2 + $0x8] sm:$0xff] %v2765_v62  ;;  %v2760_v63 = vadd.f32 %v2759_v26, %v2686_v60 }
0x1575   :  { %2768 = vst [vmem:[#allocation2] sm:$0xff] %v2760_v63 }
0x1576   :  { %3382 = shalt.err (!%p3379_p4)
}
0x1577   :  { %s3402_s22 = smov 128  }
0x1578   :  { %2781 = dma.vmem_to_hbm [thread:$0]  %s2776_s7, 256, %s4143_s8, [#allocation3], %s3402_s22, %s3402_s22, %s3398_s0  }
0x1579   :  { %3391 = dma.done.wait [#allocation3], 256  }
0x157a   :  { %3392 = vsyncadd [#allocation3], 4294967040 }
0x157b   :  { %2785 = vsyncpa [#allocation3], 1 }

</bundles_post_ra>
